<compile_context>
chip_gen: v5e
topology: v5e:2x2
jax: 0.10.0
libtpu: 0.0.40
codegen_flags: <defaults>
</compile_context>

<pallas_src>
import functools

import jax
import jax.numpy as jnp
from jax.experimental import pallas as pl
from jax.experimental.pallas import tpu as pltpu


def _mbv1_kernel(x_ref, wdw_ref, b1_ref, wpw_ref, b2_ref, o_ref, *,
                 TH, Wo, Cin, Coutp, stride, dilation, cin_chunk):
    """One (batch, output-row-tile) step of the fused MobileNetV1 block.

    x_ref   : (1, Hp, Wp, Cin)    bf16 zero-padded NHWC image (block index only
                                  depends on the batch axis -> resident in VMEM
                                  across the row tiles of one image).
    wdw_ref : (3, 3, Cin)         f32 depthwise weights, BN1 scale pre-folded.
    b1_ref  : (1, Cin)            f32 folded BN1 bias.
    wpw_ref : (Cin, Coutp)        bf16 pointwise weights, BN2 scale pre-folded.
    b2_ref  : (1, Coutp)          f32 folded BN2 bias.
    o_ref   : (1, TH, Wo, Coutp)  bf16 output row tile.
    """
    rt = pl.program_id(1)
    # First padded input row needed by this output-row tile.
    base = pl.multiple_of(rt * (TH * stride), TH * stride)
    band_h = (TH - 1) * stride + 2 * dilation + 1

    # Hoist the small per-channel constants out of the tap loop.
    wdw = wdw_ref[...]          # (3, 3, Cin) f32
    b1 = b1_ref[0]              # (Cin,)      f32

    # Pointwise accumulator across Cin chunks (f32, MXU-fed).
    z = jnp.zeros((TH * Wo, Coutp), dtype=jnp.float32)

    for c0 in range(0, Cin, cin_chunk):
        ck = min(cin_chunk, Cin - c0)

        # Load the input row band for this channel chunk once and cast to f32
        # once; all 9 depthwise taps are slices of this band (1 cast, not 9).
        if ck == Cin:
            band = x_ref[0, pl.ds(base, band_h), :, :].astype(jnp.float32)
        else:
            band = x_ref[0, pl.ds(base, band_h), :,
                         pl.ds(c0, ck)].astype(jnp.float32)

        # --- depthwise 3x3 conv: 9 shifted band slices, f32 VPU accumulate ---
        acc = jnp.zeros((TH, Wo, ck), dtype=jnp.float32)
        for kh in range(3):
            for kw in range(3):
                h0 = kh * dilation
                w0 = kw * dilation
                patch = band[h0:h0 + (TH - 1) * stride + 1:stride,
                             w0:w0 + (Wo - 1) * stride + 1:stride, :]
                acc = acc + patch * wdw[kh, kw, c0:c0 + ck]

        # --- BN1 bias + ReLU (scale already folded into wdw) ---
        y = jnp.maximum(acc + b1[c0:c0 + ck], 0.0)

        # --- pointwise 1x1 conv chunk on the MXU: bf16 x bf16 -> f32 acc ---
        yb = y.reshape(TH * Wo, ck).astype(jnp.bfloat16)
        if ck == Cin:
            wpw_chunk = wpw_ref[...]
        else:
            wpw_chunk = wpw_ref[pl.ds(c0, ck), :]
        z = z + jnp.dot(yb, wpw_chunk, preferred_element_type=jnp.float32)

    # --- BN2 bias + ReLU (scale already folded into wpw) ---
    z = jnp.maximum(z + b2_ref[...], 0.0)
    o_ref[0] = z.reshape(TH, Wo, Coutp).astype(o_ref.dtype)


def _round_up(v, m):
    return ((v + m - 1) // m) * m


def _pick_row_tile(Ho, Wo, Coutp, out_bytes, budget):
    """Largest divisor of Ho whose double-buffered output tile fits `budget`,
    preferring TH where TH*Wo is a multiple of 8 (sublane-clean reshape and a
    healthier MXU M)."""
    divs = [d for d in range(1, Ho + 1) if Ho % d == 0]
    ok = [d for d in divs if d * Wo * Coutp * out_bytes * 2 <= budget]
    if not ok:
        return 1
    pref = [d for d in ok if (d * Wo) % 8 == 0]
    return max(pref) if pref else max(ok)


def mobilenet_v1_block(x_nchw, w_dw, bn1, w_pw, bn2, *, stride=1, dilation=1):
    """Runs the fused block. x_nchw: (N, Cin, H, W) float32, output NCHW f32."""
    N, Cin, H, W = x_nchw.shape
    Cout = w_pw.shape[0]
    eps = 1e-5

    # Fold BatchNorm (eval mode) into per-channel scale/bias, then fold the
    # scales into the conv weights so the kernel only does bias adds.
    g1, be1, m1, v1 = bn1
    g2, be2, m2, v2 = bn2
    s1 = g1 / jnp.sqrt(v1 + eps)
    b1 = be1 - m1 * s1
    s2 = g2 / jnp.sqrt(v2 + eps)
    b2 = be2 - m2 * s2

    pad = dilation
    Hp, Wp = H + 2 * pad, W + 2 * pad
    Ho = (H + 2 * pad - dilation * 2 - 1) // stride + 1
    Wo = (W + 2 * pad - dilation * 2 - 1) // stride + 1

    # Channel-padding policy: lane-pad to a multiple of 128 only when the
    # channel count is big enough for unmasked 128-wide stores / MXU K-tiles
    # to beat the byte amplification.  Tiny channels stay unpadded.
    Cinp = _round_up(Cin, 128) if Cin >= 64 else Cin
    Coutp = _round_up(Cout, 128) if Cout >= 64 else Cout

    # NCHW -> NHWC bf16 activations with a zero spatial halo (one fused XLA
    # pass over the activations before the kernel).
    x = jnp.transpose(x_nchw, (0, 2, 3, 1))
    x = jnp.pad(x, ((0, 0), (pad, pad), (pad, pad), (0, Cinp - Cin)))
    x = x.astype(jnp.bfloat16)

    # Weight layouts for the kernel (BN scales folded in, channel padding is
    # zero so padded channels contribute nothing).
    wdw = jnp.transpose(w_dw[:, 0, :, :], (1, 2, 0)) * s1                 # (3,3,Cin)
    wdw = jnp.pad(wdw, ((0, 0), (0, 0), (0, Cinp - Cin))).astype(jnp.float32)
    wpw = jnp.transpose(w_pw[:, :, 0, 0], (1, 0)) * s2[None, :]           # (Cin,Cout)
    wpw = jnp.pad(wpw, ((0, Cinp - Cin), (0, Coutp - Cout))).astype(jnp.bfloat16)
    b1r = jnp.pad(b1, (0, Cinp - Cin)).reshape(1, Cinp).astype(jnp.float32)
    b2r = jnp.pad(b2, (0, Coutp - Cout)).reshape(1, Coutp).astype(jnp.float32)

    # Generation-aware VMEM sizing: big budget on 128 MiB chips (v5e/v6e),
    # conservative on v7x (64 MiB physical).
    try:
        vmem_cap = pltpu.get_tpu_info().vmem_capacity_bytes
    except Exception:
        vmem_cap = 64 << 20
    vmem_limit = int(min(vmem_cap * 3 // 4, 96 << 20))
    tile_budget = max(4 << 20, vmem_limit // 6)

    TH = _pick_row_tile(Ho, Wo, Coutp, 2, tile_budget)   # bf16 output tile
    R = Ho // TH
    cin_chunk = min(Cinp, 256)

    kernel = functools.partial(
        _mbv1_kernel, TH=TH, Wo=Wo, Cin=Cinp, Coutp=Coutp,
        stride=stride, dilation=dilation, cin_chunk=cin_chunk)

    out_nhwc = pl.pallas_call(
        kernel,
        out_shape=jax.ShapeDtypeStruct((N, Ho, Wo, Coutp), jnp.bfloat16),
        grid_spec=pltpu.PrefetchScalarGridSpec(
            num_scalar_prefetch=0,
            grid=(N, R),
            in_specs=[
                # Whole padded image; block index ignores the row-tile axis so
                # it is DMA'd once per image and stays resident in VMEM.
                pl.BlockSpec((1, Hp, Wp, Cinp), lambda n, rt: (n, 0, 0, 0)),
                pl.BlockSpec((3, 3, Cinp), lambda n, rt: (0, 0, 0)),
                pl.BlockSpec((1, Cinp), lambda n, rt: (0, 0)),
                pl.BlockSpec((Cinp, Coutp), lambda n, rt: (0, 0)),
                pl.BlockSpec((1, Coutp), lambda n, rt: (0, 0)),
            ],
            out_specs=pl.BlockSpec((1, TH, Wo, Coutp),
                                   lambda n, rt: (n, rt, 0, 0)),
        ),
        compiler_params=pltpu.CompilerParams(
            # rt "arbitrary" so a 2-TC (v7x) core split lands on the batch
            # axis: one resident image per core instead of a duplicated copy.
            dimension_semantics=("parallel", "arbitrary"),
            vmem_limit_bytes=vmem_limit),
    )(x, wdw, b1r, wpw, b2r)

    out = out_nhwc[..., :Cout] if Coutp != Cout else out_nhwc
    return jnp.transpose(out, (0, 3, 1, 2)).astype(jnp.float32)   # back to NCHW


def _reference(x_nchw, w_dw, bn1, w_pw, bn2, *, stride=1, dilation=1):
    """Pure-JAX f32 reference (lax convolutions) for correctness checking."""
    eps = 1e-5
    Cin = x_nchw.shape[1]
    g1, be1, m1, v1 = bn1
    g2, be2, m2, v2 = bn2
    y = jax.lax.conv_general_dilated(
        x_nchw, w_dw, window_strides=(stride, stride),
        padding=[(dilation, dilation), (dilation, dilation)],
        rhs_dilation=(dilation, dilation),
        dimension_numbers=("NCHW", "OIHW", "NCHW"),
        feature_group_count=Cin)
    y = (y - m1[None, :, None, None]) / jnp.sqrt(v1 + eps)[None, :, None, None]
    y = y * g1[None, :, None, None] + be1[None, :, None, None]
    y = jnp.maximum(y, 0.0)
    z = jax.lax.conv_general_dilated(
        y, w_pw, window_strides=(1, 1), padding="VALID",
        dimension_numbers=("NCHW", "OIHW", "NCHW"))
    z = (z - m2[None, :, None, None]) / jnp.sqrt(v2 + eps)[None, :, None, None]
    z = z * g2[None, :, None, None] + be2[None, :, None, None]
    return jnp.maximum(z, 0.0)


if __name__ == "__main__":
    # Small shapes consistent with the module.
    N, Cin, Cout, H, W = 2, 4, 8, 16, 16

    key = jax.random.PRNGKey(0)
    ks = jax.random.split(key, 8)

    x = jax.random.normal(ks[0], (N, Cin, H, W), dtype=jnp.float32)

    # conv1: depthwise Conv2d(inp, inp, 3, groups=inp, bias=False) -> (Cin,1,3,3)
    w_dw = jax.random.normal(ks[1], (Cin, 1, 3, 3), dtype=jnp.float32) * 0.2
    # conv2: Conv2d(inp, oup, 1, bias=False) -> (Cout, Cin, 1, 1)
    w_pw = jax.random.normal(ks[2], (Cout, Cin, 1, 1), dtype=jnp.float32) * 0.2

    # Synthetic BatchNorm parameters (gamma, beta, running_mean, running_var).
    bn1 = (1.0 + 0.1 * jax.random.normal(ks[3], (Cin,), dtype=jnp.float32),
           0.1 * jax.random.normal(ks[4], (Cin,), dtype=jnp.float32),
           0.05 * jax.random.normal(ks[5], (Cin,), dtype=jnp.float32),
           jnp.abs(jax.random.normal(ks[6], (Cin,), dtype=jnp.float32)) + 0.5)
    bn2 = (1.0 + 0.1 * jax.random.normal(ks[7], (Cout,), dtype=jnp.float32),
           jnp.zeros((Cout,), jnp.float32) + 0.05,
           jnp.zeros((Cout,), jnp.float32),
           jnp.ones((Cout,), jnp.float32))

    # Exercise the default config and the dilation>1 (padding=dilation) path.
    for (stride, dilation) in [(1, 1), (1, 2)]:
        out = mobilenet_v1_block(x, w_dw, bn1, w_pw, bn2,
                                 stride=stride, dilation=dilation)
        out = jax.block_until_ready(out)
        ref = _reference(x, w_dw, bn1, w_pw, bn2,
                         stride=stride, dilation=dilation)
        # bf16 activations, bf16 pointwise weights and bf16 output in the
        # kernel -> compare against the f32 reference with bf16 tolerance.
        if not jnp.allclose(out, ref, rtol=2e-2, atol=2e-2):
            err = float(jnp.max(jnp.abs(out - ref)))
            raise AssertionError(
                f"Pallas kernel does not match reference "
                f"(stride={stride}, dilation={dilation}, max abs err={err})")

    print("KERNEL_OK")
</pallas_src>

<mosaic_0001>
module attributes {stable_mosaic.version = 11 : i64} {
  func.func @_mbv1_kernel(%arg0: i32, %arg1: i32, %arg2: memref<1x18x18x4xbf16, #tpu.memory_space<vmem>>, %arg3: memref<3x3x4xf32, #tpu.memory_space<vmem>>, %arg4: memref<1x4xf32, #tpu.memory_space<vmem>>, %arg5: memref<4x8xbf16, #tpu.memory_space<vmem>>, %arg6: memref<1x8xf32, #tpu.memory_space<vmem>>, %arg7: memref<1x16x16x8xbf16, #tpu.memory_space<vmem>>) attributes {dimension_semantics = [#tpu.dimension_semantics<parallel>, #tpu.dimension_semantics<arbitrary>], iteration_bounds = array<i64: 2, 1>, scalar_prefetch = 0 : i64, scratch_operands = 0 : i64, tpu.core_type = #tpu.core_type<tc>, window_params = [{transform_indices = @transform_0, window_bounds = array<i64: 1, 18, 18, 4>}, {pipeline_mode = #tpu.pipeline_mode<synchronous>, transform_indices = @transform_1, window_bounds = array<i64: 3, 3, 4>}, {pipeline_mode = #tpu.pipeline_mode<synchronous>, transform_indices = @transform_2, window_bounds = array<i64: 1, 4>}, {pipeline_mode = #tpu.pipeline_mode<synchronous>, transform_indices = @transform_3, window_bounds = array<i64: 4, 8>}, {pipeline_mode = #tpu.pipeline_mode<synchronous>, transform_indices = @transform_4, window_bounds = array<i64: 1, 8>}, {transform_indices = @transform_5, window_bounds = array<i64: 1, 16, 16, 8>}]} {
    %c16_i32 = arith.constant 16 : i32
    %0 = arith.muli %arg1, %c16_i32 : i32
    %1 = tpu.assume_multiple %0, 16 : i32
    %c0 = arith.constant 0 : index
    %c0_0 = arith.constant 0 : index
    %c0_1 = arith.constant 0 : index
    %2 = vector.load %arg3[%c0, %c0_0, %c0_1] : memref<3x3x4xf32, #tpu.memory_space<vmem>>, vector<3x3x4xf32>
    %c0_2 = arith.constant 0 : index
    %c0_3 = arith.constant 0 : index
    %3 = vector.load %arg4[%c0_2, %c0_3] : memref<1x4xf32, #tpu.memory_space<vmem>>, vector<1x4xf32>
    %4 = vector.shape_cast %3 : vector<1x4xf32> to vector<4xf32>
    %cst = arith.constant 0.000000e+00 : f32
    %5 = vector.broadcast %cst : f32 to vector<256x8xf32>
    %c0_4 = arith.constant 0 : index
    %6 = arith.index_cast %1 : i32 to index
    %c0_5 = arith.constant 0 : index
    %c0_6 = arith.constant 0 : index
    %7 = vector.load %arg2[%c0_4, %6, %c0_5, %c0_6] : memref<1x18x18x4xbf16, #tpu.memory_space<vmem>>, vector<1x18x18x4xbf16>
    %8 = vector.shape_cast %7 : vector<1x18x18x4xbf16> to vector<18x18x4xbf16>
    %9 = arith.extf %8 : vector<18x18x4xbf16> to vector<18x18x4xf32>
    %cst_7 = arith.constant 0.000000e+00 : f32
    %10 = vector.broadcast %cst_7 : f32 to vector<16x16x4xf32>
    %11 = vector.extract_strided_slice %9 {offsets = [0, 0, 0], sizes = [16, 16, 4], strides = [1, 1, 1]} : vector<18x18x4xf32> to vector<16x16x4xf32>
    %12 = vector.extract_strided_slice %2 {offsets = [0, 0, 0], sizes = [1, 1, 4], strides = [1, 1, 1]} : vector<3x3x4xf32> to vector<1x1x4xf32>
    %13 = vector.shape_cast %12 : vector<1x1x4xf32> to vector<4xf32>
    %14 = vector.shape_cast %13 : vector<4xf32> to vector<1x1x4xf32>
    %15 = vector.broadcast %14 : vector<1x1x4xf32> to vector<16x16x4xf32>
    %16 = arith.mulf %11, %15 : vector<16x16x4xf32>
    %17 = arith.addf %10, %16 : vector<16x16x4xf32>
    %18 = vector.extract_strided_slice %9 {offsets = [0, 1, 0], sizes = [16, 16, 4], strides = [1, 1, 1]} : vector<18x18x4xf32> to vector<16x16x4xf32>
    %19 = vector.extract_strided_slice %2 {offsets = [0, 1, 0], sizes = [1, 1, 4], strides = [1, 1, 1]} : vector<3x3x4xf32> to vector<1x1x4xf32>
    %20 = vector.shape_cast %19 : vector<1x1x4xf32> to vector<4xf32>
    %21 = vector.shape_cast %20 : vector<4xf32> to vector<1x1x4xf32>
    %22 = vector.broadcast %21 : vector<1x1x4xf32> to vector<16x16x4xf32>
    %23 = arith.mulf %18, %22 : vector<16x16x4xf32>
    %24 = arith.addf %17, %23 : vector<16x16x4xf32>
    %25 = vector.extract_strided_slice %9 {offsets = [0, 2, 0], sizes = [16, 16, 4], strides = [1, 1, 1]} : vector<18x18x4xf32> to vector<16x16x4xf32>
    %26 = vector.extract_strided_slice %2 {offsets = [0, 2, 0], sizes = [1, 1, 4], strides = [1, 1, 1]} : vector<3x3x4xf32> to vector<1x1x4xf32>
    %27 = vector.shape_cast %26 : vector<1x1x4xf32> to vector<4xf32>
    %28 = vector.shape_cast %27 : vector<4xf32> to vector<1x1x4xf32>
    %29 = vector.broadcast %28 : vector<1x1x4xf32> to vector<16x16x4xf32>
    %30 = arith.mulf %25, %29 : vector<16x16x4xf32>
    %31 = arith.addf %24, %30 : vector<16x16x4xf32>
    %32 = vector.extract_strided_slice %9 {offsets = [1, 0, 0], sizes = [16, 16, 4], strides = [1, 1, 1]} : vector<18x18x4xf32> to vector<16x16x4xf32>
    %33 = vector.extract_strided_slice %2 {offsets = [1, 0, 0], sizes = [1, 1, 4], strides = [1, 1, 1]} : vector<3x3x4xf32> to vector<1x1x4xf32>
    %34 = vector.shape_cast %33 : vector<1x1x4xf32> to vector<4xf32>
    %35 = vector.shape_cast %34 : vector<4xf32> to vector<1x1x4xf32>
    %36 = vector.broadcast %35 : vector<1x1x4xf32> to vector<16x16x4xf32>
    %37 = arith.mulf %32, %36 : vector<16x16x4xf32>
    %38 = arith.addf %31, %37 : vector<16x16x4xf32>
    %39 = vector.extract_strided_slice %9 {offsets = [1, 1, 0], sizes = [16, 16, 4], strides = [1, 1, 1]} : vector<18x18x4xf32> to vector<16x16x4xf32>
    %40 = vector.extract_strided_slice %2 {offsets = [1, 1, 0], sizes = [1, 1, 4], strides = [1, 1, 1]} : vector<3x3x4xf32> to vector<1x1x4xf32>
    %41 = vector.shape_cast %40 : vector<1x1x4xf32> to vector<4xf32>
    %42 = vector.shape_cast %41 : vector<4xf32> to vector<1x1x4xf32>
    %43 = vector.broadcast %42 : vector<1x1x4xf32> to vector<16x16x4xf32>
    %44 = arith.mulf %39, %43 : vector<16x16x4xf32>
    %45 = arith.addf %38, %44 : vector<16x16x4xf32>
    %46 = vector.extract_strided_slice %9 {offsets = [1, 2, 0], sizes = [16, 16, 4], strides = [1, 1, 1]} : vector<18x18x4xf32> to vector<16x16x4xf32>
    %47 = vector.extract_strided_slice %2 {offsets = [1, 2, 0], sizes = [1, 1, 4], strides = [1, 1, 1]} : vector<3x3x4xf32> to vector<1x1x4xf32>
    %48 = vector.shape_cast %47 : vector<1x1x4xf32> to vector<4xf32>
    %49 = vector.shape_cast %48 : vector<4xf32> to vector<1x1x4xf32>
    %50 = vector.broadcast %49 : vector<1x1x4xf32> to vector<16x16x4xf32>
    %51 = arith.mulf %46, %50 : vector<16x16x4xf32>
    %52 = arith.addf %45, %51 : vector<16x16x4xf32>
    %53 = vector.extract_strided_slice %9 {offsets = [2, 0, 0], sizes = [16, 16, 4], strides = [1, 1, 1]} : vector<18x18x4xf32> to vector<16x16x4xf32>
    %54 = vector.extract_strided_slice %2 {offsets = [2, 0, 0], sizes = [1, 1, 4], strides = [1, 1, 1]} : vector<3x3x4xf32> to vector<1x1x4xf32>
    %55 = vector.shape_cast %54 : vector<1x1x4xf32> to vector<4xf32>
    %56 = vector.shape_cast %55 : vector<4xf32> to vector<1x1x4xf32>
    %57 = vector.broadcast %56 : vector<1x1x4xf32> to vector<16x16x4xf32>
    %58 = arith.mulf %53, %57 : vector<16x16x4xf32>
    %59 = arith.addf %52, %58 : vector<16x16x4xf32>
    %60 = vector.extract_strided_slice %9 {offsets = [2, 1, 0], sizes = [16, 16, 4], strides = [1, 1, 1]} : vector<18x18x4xf32> to vector<16x16x4xf32>
    %61 = vector.extract_strided_slice %2 {offsets = [2, 1, 0], sizes = [1, 1, 4], strides = [1, 1, 1]} : vector<3x3x4xf32> to vector<1x1x4xf32>
    %62 = vector.shape_cast %61 : vector<1x1x4xf32> to vector<4xf32>
    %63 = vector.shape_cast %62 : vector<4xf32> to vector<1x1x4xf32>
    %64 = vector.broadcast %63 : vector<1x1x4xf32> to vector<16x16x4xf32>
    %65 = arith.mulf %60, %64 : vector<16x16x4xf32>
    %66 = arith.addf %59, %65 : vector<16x16x4xf32>
    %67 = vector.extract_strided_slice %9 {offsets = [2, 2, 0], sizes = [16, 16, 4], strides = [1, 1, 1]} : vector<18x18x4xf32> to vector<16x16x4xf32>
    %68 = vector.extract_strided_slice %2 {offsets = [2, 2, 0], sizes = [1, 1, 4], strides = [1, 1, 1]} : vector<3x3x4xf32> to vector<1x1x4xf32>
    %69 = vector.shape_cast %68 : vector<1x1x4xf32> to vector<4xf32>
    %70 = vector.shape_cast %69 : vector<4xf32> to vector<1x1x4xf32>
    %71 = vector.broadcast %70 : vector<1x1x4xf32> to vector<16x16x4xf32>
    %72 = arith.mulf %67, %71 : vector<16x16x4xf32>
    %73 = arith.addf %66, %72 : vector<16x16x4xf32>
    %74 = vector.shape_cast %4 : vector<4xf32> to vector<1x1x4xf32>
    %75 = vector.broadcast %74 : vector<1x1x4xf32> to vector<16x16x4xf32>
    %76 = arith.addf %73, %75 : vector<16x16x4xf32>
    %cst_8 = arith.constant 0.000000e+00 : f32
    %77 = vector.broadcast %cst_8 : f32 to vector<16x16x4xf32>
    %78 = arith.maximumf %76, %77 : vector<16x16x4xf32>
    %79 = vector.shape_cast %78 : vector<16x16x4xf32> to vector<256x4xf32>
    %80 = arith.truncf %79 : vector<256x4xf32> to vector<256x4xbf16>
    %c0_9 = arith.constant 0 : index
    %c0_10 = arith.constant 0 : index
    %81 = vector.load %arg5[%c0_9, %c0_10] : memref<4x8xbf16, #tpu.memory_space<vmem>>, vector<4x8xbf16>
    %cst_11 = arith.constant dense<0.000000e+00> : vector<256x8xf32>
    %82 = tpu.matmul %80, %81, %cst_11 {dimension_numbers = #tpu.dot_dimension_numbers<[1], [0], [0], [1], [0, 0, 1, 1], [], []>} : vector<256x4xbf16>, vector<4x8xbf16>, vector<256x8xf32> -> vector<256x8xf32>
    %83 = arith.addf %5, %82 : vector<256x8xf32>
    %c0_12 = arith.constant 0 : index
    %c0_13 = arith.constant 0 : index
    %84 = vector.load %arg6[%c0_12, %c0_13] : memref<1x8xf32, #tpu.memory_space<vmem>>, vector<1x8xf32>
    %85 = vector.broadcast %84 : vector<1x8xf32> to vector<256x8xf32>
    %86 = arith.addf %83, %85 : vector<256x8xf32>
    %cst_14 = arith.constant 0.000000e+00 : f32
    %87 = vector.broadcast %cst_14 : f32 to vector<256x8xf32>
    %88 = arith.maximumf %86, %87 : vector<256x8xf32>
    %89 = vector.shape_cast %88 : vector<256x8xf32> to vector<16x16x8xf32>
    %90 = arith.truncf %89 : vector<16x16x8xf32> to vector<16x16x8xbf16>
    %c0_15 = arith.constant 0 : index
    %c0_16 = arith.constant 0 : index
    %c0_17 = arith.constant 0 : index
    %c0_18 = arith.constant 0 : index
    %91 = vector.load %arg7[%c0_15, %c0_16, %c0_17, %c0_18] : memref<1x16x16x8xbf16, #tpu.memory_space<vmem>>, vector<1x16x16x8xbf16>
    %92 = vector.shape_cast %91 : vector<1x16x16x8xbf16> to vector<16x16x8xbf16>
    %93 = vector.shape_cast %90 : vector<16x16x8xbf16> to vector<1x16x16x8xbf16>
    tpu.vector_store %arg7[%c0_15, %c0_16, %c0_17, %c0_18], %93 {strides = array<i32>} : memref<1x16x16x8xbf16, #tpu.memory_space<vmem>>, vector<1x16x16x8xbf16>,
    return
  }
  func.func @transform_0(%arg0: i32, %arg1: i32) -> (i32, i32, i32, i32) {
    %c0_i32 = arith.constant 0 : i32
    %c0_i32_0 = arith.constant 0 : i32
    %c0_i32_1 = arith.constant 0 : i32
    %c0_i32_2 = arith.constant 0 : i32
    return %arg0, %c0_i32, %c0_i32_0, %c0_i32_1 : i32, i32, i32, i32
  }
  func.func @transform_1(%arg0: i32, %arg1: i32) -> (i32, i32, i32) {
    %c0_i32 = arith.constant 0 : i32
    %c0_i32_0 = arith.constant 0 : i32
    %c0_i32_1 = arith.constant 0 : i32
    %c0_i32_2 = arith.constant 0 : i32
    return %c0_i32, %c0_i32_0, %c0_i32_1 : i32, i32, i32
  }
  func.func @transform_2(%arg0: i32, %arg1: i32) -> (i32, i32) {
    %c0_i32 = arith.constant 0 : i32
    %c0_i32_0 = arith.constant 0 : i32
    %c0_i32_1 = arith.constant 0 : i32
    return %c0_i32, %c0_i32_0 : i32, i32
  }
  func.func @transform_3(%arg0: i32, %arg1: i32) -> (i32, i32) {
    %c0_i32 = arith.constant 0 : i32
    %c0_i32_0 = arith.constant 0 : i32
    %c0_i32_1 = arith.constant 0 : i32
    return %c0_i32, %c0_i32_0 : i32, i32
  }
  func.func @transform_4(%arg0: i32, %arg1: i32) -> (i32, i32) {
    %c0_i32 = arith.constant 0 : i32
    %c0_i32_0 = arith.constant 0 : i32
    %c0_i32_1 = arith.constant 0 : i32
    return %c0_i32, %c0_i32_0 : i32, i32
  }
  func.func @transform_5(%arg0: i32, %arg1: i32) -> (i32, i32, i32, i32) {
    %c0_i32 = arith.constant 0 : i32
    %c0_i32_0 = arith.constant 0 : i32
    %c0_i32_1 = arith.constant 0 : i32
    return %arg0, %arg1, %c0_i32, %c0_i32_0 : i32, i32, i32, i32
  }
}

</mosaic_0001>

<bundles_post_ra>
// kernel: tpu_custom_call.1
= control target key start
LH: loop header
LB: loop body
LE: loop exit
PB: predicated region body
PF: predicated region fallthrough
CT: control target
= control target key end

     0   :  { %s2583_s18 = smov 0   ;;  %s2585_s19 = smov 0   ;;  %s3935_s0 = inlined_call_operand.vmem [shape: bf16[2,18,18,4], index: 0, kind: input, shape index: {}]   ;;  %s3936_s1 = inlined_call_operand.vmem [shape: f32[3,3,4], index: 1, kind: input, shape index: {}]   ;;  %s3937_s2 = inlined_call_operand.vmem [shape: f32[1,4], index: 2, kind: input, shape index: {}]   ;;  %s3938_s3 = inlined_call_operand.vmem [shape: bf16[4,8], index: 3, kind: input, shape index: {}]   ;;  %s3939_s4 = inlined_call_operand.vmem [shape: f32[1,8], index: 4, kind: input, shape index: {}]   ;;  %s3940_s5 = inlined_call_operand.vmem [shape: bf16[2,16,16,8], index: 5, kind: output, shape index: {}]  }
   0x1   :  { %s2587_s20 = smov 0  }
   0x2 LB: > { %s27_s21 = sadd.s32 1, %s2547_s19  ;;  %p2430_p0 = scmp.ge.s32.totalorder %s2551_s20, 1  ;;  %s2551_s20 = sphi %s2587_s20, %s15_s20   ;;  %s2547_s19 = sphi %s2585_s19, %s3990_s19   ;;  %s2543_s18 = sphi %s2583_s18, %s3989_s18  }
   0x3   : > { %p29_p1 = scmp.ge.s32.totalorder %s27_s21, 2  ;;  %p201_p2 = scmp.lt.s32.totalorder %s2551_s20, 3 }
   0x5   : > { %s3992_s21 = smov (%p29_p1, %s27_s21), 0  ;;  %p202_p3 = pnand %p2430_p0, %p201_p2 }
   0x7   : > { %205 = sbr.rel (%p202_p3) target bundleno = 487 (0x1e7), region = 40 }
   0xc   : > { %v2093_v0 = vld [vmem:[%s3938_s3] sm:$0x3]  ;;  %vm2147_vm0 = vcmask 1041408   ;;  %p234_p4 = scmp.lt.s32.totalorder %s2543_s18, 1  ;;  %v253_v3 = vld [vmem:[%s3936_s1 + $0x4] sm:$0x7] }
   0xd   : > { %v2149_v1 = vsel %vm2147_vm0, %v2093_v0, 0  ;;  %v252_v2 = vld [vmem:[%s3936_s1] sm:$0x7]  ;;  %v254_v4 = vld [vmem:[%s3936_s1 + $0x8] sm:$0x7]  ;;  %vm529_vm1 = vcmask 1046528  }
   0xe   : > { %2158 = vmatpush.bf16.msra.mxu0 %v2149_v1  ;;  %2497 = vmatpush.bf16.msra.mxu1 %v2149_v1  ;;  %s3994_s18 = smov (!%p234_p4, %s2543_s18), 1  ;;  %v2616_v5 = vperm.slane %v252_v2, 0  ;;  %v2618_v6 = vperm.slane %v252_v2, 1  ;;  %v2620_v7 = vperm.slane %v252_v2, 2  ;;  %vm771_vm2 = vcmask 1045504  }
   0xf   : > { %2498 = vmatpush.bf16.msra.mxu2 %v2149_v1  ;;  %2499 = vmatpush.bf16.msra.mxu3 %v2149_v1  ;;  %s2500_s30 = smul.u32 216, %s3994_s18  ;;  %v2627_v8 = vperm.slane %v253_v3, 0  ;;  %v2629_v9 = vperm.slane %v253_v3, 1  ;;  %v2631_v10 = vperm.slane %v253_v3, 2  ;;  %v2633_v11 = vperm.slane %v254_v4, 0  ;;  %s2452_s17 = sshll.u32 %s3994_s18, 7 }
  0x10   : > { %v2638_v15 = vperm.slane %v254_v4, 1  ;;  %v2640_v16 = vperm.slane %v254_v4, 2  ;;  %vm2098_vm3 = vcmask 31744   ;;  %vm2304_vm4 = vcmask 60416   ;;  %s3823_s23 = scalar_lea.vmem %s3940_s5, %s2452_s17 }
  0x11   : > { %s2625_s8 = scalar_lea.vmem %s3935_s0, %s2500_s30 }
  0x12   : > { %v2454_v12 = vld [vmem:[%s2625_s8] sm:$0xff]   ;;  %v261_v13 = vld [vmem:[%s2625_s8 + $0x8] sm:$0x1]  ;;  %v262_v14 = vld [vmem:[%s2625_s8 + $0xc] sm:$0xff]  }
  0x13   : > { %v2455_v17 = vunpack.c.l.bf16 %v2454_v12  ;;  %v2456_v18 = vunpack.c.h.bf16 %v2454_v12  ;;  %v264_v19 = vld [vmem:[%s2625_s8 + $0x14] sm:$0x1]  ;;  %v2489_v20 = vld [vmem:[%s2625_s8 + $0x18] sm:$0xff]   ;;  %v267_v21 = vld [vmem:[%s2625_s8 + $0x20] sm:$0x1]  ;;  %v315_v22 = vunpack.c.l.bf16 %v261_v13  ;;  %v2645_v23 = vunpack.c.l.bf16 %v262_v14 }
  0x14   : > { %v2647_v24 = vunpack.c.l.bf16 %v2489_v20  ;;  %v2649_v25 = vunpack.c.h.bf16 %v2489_v20  ;;  %v2651_v26 = vunpack.c.h.bf16 %v262_v14  ;;  %v2653_v27 = vunpack.c.l.bf16 %v264_v19 }
  0x15   : > { %v2655_v28 = vunpack.c.l.bf16 %v267_v21  ;;  %v368_v29 = vmul.f32 %v2455_v17, %v2616_v5  ;;  %v369_v30 = vmul.f32 %v2456_v18, %v2616_v5  ;;  %v433_v31 = vmul.f32 %v2455_v17, %v2618_v6  ;;  %v2490_v21 = vld [vmem:[%s2625_s8 + $0x30] sm:$0xff]  }
  0x16   : > { %v434_v32 = vmul.f32 %v2456_v18, %v2618_v6  ;;  %v435_v33 = vmul.f32 %v2618_v6, %v315_v22  ;;  %v675_v34 = vmul.f32 %v2455_v17, %v2620_v7  ;;  %v676_v35 = vmul.f32 %v2456_v18, %v2620_v7 }
  0x17   : > { %v530_v36 = vrot.slane %v433_v31, 1  ;;  %v677_v37 = vmul.f32 %v2620_v7, %v315_v22  ;;  %v917_v38 = vmul.f32 %v2627_v8, %v2645_v23  ;;  %v918_v39 = vmul.f32 %v2627_v8, %v2651_v26 }
  0x18   : > { %v531_v40 = vrot.slane %v434_v32, 1  ;;  %v533_v41 = vrot.slane %v435_v33, 1  ;;  %v772_v42 = vrot.slane %v675_v34, 2  ;;  %v773_v43 = vrot.slane %v676_v35, 2 }
  0x19   : > { %v775_v44 = vrot.slane %v677_v37, 2  ;;  %v982_v45 = vmul.f32 %v2629_v9, %v2645_v23  ;;  %v983_v46 = vmul.f32 %v2629_v9, %v2651_v26  ;;  %v984_v47 = vmul.f32 %v2629_v9, %v2653_v27 }
  0x1a   : > { %v532_v48 = vsel %vm529_vm1, %v530_v36, %v531_v40  ;;  %v534_v49 = vsel %vm529_vm1, %v531_v40, %v533_v41  ;;  %v774_v50 = vsel %vm771_vm2, %v772_v42, %v773_v43  ;;  %v1223_v51 = vmul.f32 %v2631_v10, %v2645_v23  ;;  %v2491_v36 = vld [vmem:[%s2625_s8 + $0x48] sm:$0xff]   ;;  %v273_v41 = vld [vmem:[%s2625_s8 + $0x38] sm:$0x1] }
  0x1b   : > { %v642_v52 = vadd.f32 %v532_v48, %v368_v29  ;;  %v643_v53 = vadd.f32 %v534_v49, %v369_v30  ;;  %v776_v54 = vsel %vm771_vm2, %v773_v43, %v775_v44  ;;  %v1078_v55 = vrot.slane %v982_v45, 1 }
  0x1c   : > { %v1079_v56 = vrot.slane %v983_v46, 1  ;;  %v1081_v57 = vrot.slane %v984_v47, 1  ;;  %v1224_v58 = vmul.f32 %v2631_v10, %v2651_v26  ;;  %v1225_v59 = vmul.f32 %v2631_v10, %v2653_v27  ;;  %v274_v46 = vld [vmem:[%s2625_s8 + $0x3c] sm:$0xff]  }
  0x1d   : > { %v884_v60 = vadd.f32 %v774_v50, %v642_v52  ;;  %v885_v61 = vadd.f32 %v776_v54, %v643_v53  ;;  %v1319_v62 = vrot.slane %v1223_v51, 2  ;;  %v1464_v63 = vmul.f32 %v2647_v24, %v2633_v11  ;;  %v276_v50 = vld [vmem:[%s2625_s8 + $0x44] sm:$0x1]  ;;  %v279_v52 = vld [vmem:[%s2625_s8 + $0x50] sm:$0x1] }
  0x1e   : > { %v1080_v0 = vsel %vm529_vm1, %v1078_v55, %v1079_v56  ;;  %v1082_v1 = vsel %vm529_vm1, %v1079_v56, %v1081_v57  ;;  %v1320_v2 = vrot.slane %v1224_v58, 2  ;;  %v1322_v3 = vrot.slane %v1225_v59, 2  ;;  %v2728_v59 = vld [vmem:[%s3937_s2] ss:$0 sm:$0xff] }
  0x1f   : > { %v949_v4 = vadd.f32 %v917_v38, %v884_v60  ;;  %v950_v12 = vadd.f32 %v918_v39, %v885_v61  ;;  %v1465_v13 = vmul.f32 %v2649_v25, %v2633_v11  ;;  %v1529_v14 = vmul.f32 %v2647_v24, %v2638_v15 }
  0x20   : > { %v1321_v17 = vsel %vm771_vm2, %v1319_v62, %v1320_v2  ;;  %v1323_v18 = vsel %vm771_vm2, %v1320_v2, %v1322_v3  ;;  %v1530_v19 = vmul.f32 %v2649_v25, %v2638_v15  ;;  %v1531_v20 = vmul.f32 %v2638_v15, %v2655_v28 }
  0x21   : > { %v1190_v22 = vadd.f32 %v1080_v0, %v949_v4  ;;  %v1191_v29 = vadd.f32 %v1082_v1, %v950_v12  ;;  %v1625_v30 = vrot.slane %v1529_v14, 1  ;;  %v1770_v31 = vmul.f32 %v2647_v24, %v2640_v16 }
  0x22   : > { %v1626_v32 = vrot.slane %v1530_v19, 1  ;;  %v1628_v33 = vrot.slane %v1531_v20, 1  ;;  %v1771_v34 = vmul.f32 %v2649_v25, %v2640_v16  ;;  %v1772_v35 = vmul.f32 %v2640_v16, %v2655_v28 }
  0x23   : > { %v1431_v37 = vadd.f32 %v1321_v17, %v1190_v22  ;;  %v1432_v38 = vadd.f32 %v1323_v18, %v1191_v29  ;;  %v1866_v39 = vrot.slane %v1770_v31, 2  ;;  %v2707_v40 = vunpack.c.l.bf16 %v2490_v21 }
  0x24   : > { %v1627_v42 = vsel %vm529_vm1, %v1625_v30, %v1626_v32  ;;  %v1629_v43 = vsel %vm529_vm1, %v1626_v32, %v1628_v33  ;;  %v1867_v44 = vrot.slane %v1771_v34, 2  ;;  %v1869_v45 = vrot.slane %v1772_v35, 2 }
  0x25   : > { %v1496_v47 = vadd.f32 %v1464_v63, %v1431_v37  ;;  %v1497_v48 = vadd.f32 %v1465_v13, %v1432_v38  ;;  %v2713_v49 = vunpack.c.h.bf16 %v2490_v21  ;;  %v2716_v51 = vunpack.c.l.bf16 %v2491_v36 }
  0x26   : > { %v1868_v53 = vsel %vm771_vm2, %v1866_v39, %v1867_v44  ;;  %v1870_v54 = vsel %vm771_vm2, %v1867_v44, %v1869_v45  ;;  %v2721_v55 = vunpack.c.h.bf16 %v2491_v36  ;;  %v2723_v56 = vunpack.c.l.bf16 %v273_v41 }
  0x27   : > { %v1737_v57 = vadd.f32 %v1627_v42, %v1496_v47  ;;  %v1738_v58 = vadd.f32 %v1629_v43, %v1497_v48  ;;  %v2730_v60 = vunpack.c.l.bf16 %v274_v46  ;;  %v2732_v61 = vunpack.c.h.bf16 %v274_v46 }
  0x28   : > { %v2734_v62 = vunpack.c.l.bf16 %v276_v50  ;;  %v2736_v63 = vunpack.c.l.bf16 %v279_v52  ;;  %v376_v0 = vmul.f32 %v2707_v40, %v2616_v5  ;;  %v377_v1 = vmul.f32 %v2713_v49, %v2616_v5 }
  0x29   : > { %3965 = vst [vmem:[#allocation2_spill] sm:$0xff] %v2732_v61  ;;  %v1978_v2 = vadd.f32 %v1868_v53, %v1737_v57  ;;  %v1979_v3 = vadd.f32 %v1870_v54, %v1738_v58  ;;  %v445_v4 = vmul.f32 %v2707_v40, %v2618_v6  ;;  %v446_v12 = vmul.f32 %v2713_v49, %v2618_v6 }
  0x2a   : > { %3966 = vst [vmem:[#allocation3_spill] sm:$0xff] %v2734_v62  ;;  %v447_v13 = vmul.f32 %v2618_v6, %v2723_v56  ;;  %v687_v14 = vmul.f32 %v2707_v40, %v2620_v7  ;;  %v688_v17 = vmul.f32 %v2713_v49, %v2620_v7  ;;  %v689_v18 = vmul.f32 %v2620_v7, %v2723_v56 }
  0x2b   : > { %v2013_v19 = vadd.f32 %v2728_v59, %v1978_v2  ;;  %v2014_v20 = vadd.f32 %v2728_v59, %v1979_v3  ;;  %v550_v21 = vrot.slane %v445_v4, 1  ;;  %v551_v22 = vrot.slane %v446_v12, 1 }
  0x2c   : > { %v553_v29 = vrot.slane %v447_v13, 1  ;;  %v792_v30 = vrot.slane %v687_v14, 2  ;;  %v793_v31 = vrot.slane %v688_v17, 2  ;;  %v795_v32 = vrot.slane %v689_v18, 2 }
  0x2d   : > { %v2045_v33 = vmax.f32 %v2013_v19, 0.0  ;;  %v2046_v34 = vmax.f32 %v2014_v20, 0.0  ;;  %v552_v35 = vsel %vm529_vm1, %v550_v21, %v551_v22  ;;  %v925_v36 = vmul.f32 %v2627_v8, %v2730_v60 }
  0x2e   : > { %v554_v37 = vsel %vm529_vm1, %v551_v22, %v553_v29  ;;  %v650_v38 = vadd.f32 %v552_v35, %v376_v0  ;;  %v794_v39 = vsel %vm771_vm2, %v792_v30, %v793_v31  ;;  %v796_v41 = vsel %vm771_vm2, %v793_v31, %v795_v32  ;;  %v2492_v30 = vld [vmem:[%s2625_s8 + $0x60] sm:$0xff]  }
  0x2f   : > { %v2077_v42 = vpack.c.bf16 %v2046_v34, %v2045_v33  ;;  %v651_v43 = vadd.f32 %v554_v37, %v377_v1  ;;  %v926_v44 = vmul.f32 %v2627_v8, %v2732_v61  ;;  %v994_v45 = vmul.f32 %v2629_v9, %v2730_v60 }
  0x30   : > { %v892_v46 = vadd.f32 %v794_v39, %v650_v38  ;;  %v995_v47 = vmul.f32 %v2629_v9, %v2732_v61  ;;  %v996_v48 = vmul.f32 %v2629_v9, %v2734_v62  ;;  %v1235_v50 = vmul.f32 %v2631_v10, %v2730_v60  ;;  %v2493_v39 = vld [vmem:[%s2625_s8 + $0x78] sm:$0xff]  }
  0x31   : > { %2434 = vmatmul.msk.bf16.vlgmr.msra.gmra.mxu0 %vm2098_vm3, %v2077_v42  ;;  %v893_v52 = vadd.f32 %v796_v41, %v651_v43  ;;  %v1098_v53 = vrot.slane %v994_v45, 1  ;;  %v1236_v54 = vmul.f32 %v2631_v10, %v2732_v61  ;;  %v1237_v57 = vmul.f32 %v2631_v10, %v2734_v62 }
  0x32   : > { %v957_v58 = vadd.f32 %v925_v36, %v892_v46  ;;  %v1099_v0 = vrot.slane %v995_v47, 1  ;;  %v1101_v1 = vrot.slane %v996_v48, 1  ;;  %v1339_v2 = vrot.slane %v1235_v50, 2  ;;  %v285_v50 = vld [vmem:[%s2625_s8 + $0x68] sm:$0x1] }
  0x33   : > { %v958_v3 = vadd.f32 %v926_v44, %v893_v52  ;;  %v1340_v4 = vrot.slane %v1236_v54, 2  ;;  %v1342_v12 = vrot.slane %v1237_v57, 2  ;;  %v1472_v13 = vmul.f32 %v2716_v51, %v2633_v11  ;;  %v286_v52 = vld [vmem:[%s2625_s8 + $0x6c] sm:$0xff]  }
  0x34   : > { %v1100_v14 = vsel %vm529_vm1, %v1098_v53, %v1099_v0  ;;  %v1102_v17 = vsel %vm529_vm1, %v1099_v0, %v1101_v1  ;;  %v1473_v18 = vmul.f32 %v2721_v55, %v2633_v11  ;;  %v1541_v19 = vmul.f32 %v2716_v51, %v2638_v15  ;;  %v291_v1 = vld [vmem:[%s2625_s8 + $0x80] sm:$0x1] }
  0x35   : > { %v1198_v20 = vadd.f32 %v1100_v14, %v957_v58  ;;  %v1199_v21 = vadd.f32 %v1102_v17, %v958_v3  ;;  %v1341_v22 = vsel %vm771_vm2, %v1339_v2, %v1340_v4  ;;  %v1343_v29 = vsel %vm771_vm2, %v1340_v4, %v1342_v12  ;;  %v288_v58 = vld [vmem:[%s2625_s8 + $0x74] sm:$0x1] }
  0x36   : > { %v1542_v31 = vmul.f32 %v2721_v55, %v2638_v15  ;;  %v1543_v32 = vmul.f32 %v2638_v15, %v2736_v63  ;;  %v1645_v33 = vrot.slane %v1541_v19, 1  ;;  %v1782_v34 = vmul.f32 %v2716_v51, %v2640_v16 }
  0x37   : > { %v1439_v35 = vadd.f32 %v1341_v22, %v1198_v20  ;;  %v1440_v36 = vadd.f32 %v1343_v29, %v1199_v21  ;;  %v1783_v37 = vmul.f32 %v2721_v55, %v2640_v16  ;;  %v1784_v38 = vmul.f32 %v2640_v16, %v2736_v63 }
  0x38   : > { %v1646_v41 = vrot.slane %v1542_v31, 1  ;;  %v1648_v42 = vrot.slane %v1543_v32, 1  ;;  %v1886_v43 = vrot.slane %v1782_v34, 2  ;;  %v2799_v44 = vunpack.c.l.bf16 %v2492_v30 }
  0x39   : > { %v1504_v45 = vadd.f32 %v1472_v13, %v1439_v35  ;;  %v1505_v46 = vadd.f32 %v1473_v18, %v1440_v36  ;;  %v1887_v47 = vrot.slane %v1783_v37, 2  ;;  %v1889_v48 = vrot.slane %v1784_v38, 2 }
  0x3a   : > { %v1647_v53 = vsel %vm529_vm1, %v1645_v33, %v1646_v41  ;;  %v1649_v54 = vsel %vm529_vm1, %v1646_v41, %v1648_v42  ;;  %v2805_v57 = vunpack.c.h.bf16 %v2492_v30  ;;  %v2808_v0 = vunpack.c.l.bf16 %v2493_v39 }
  0x3b   : > { %v1745_v2 = vadd.f32 %v1647_v53, %v1504_v45  ;;  %v1746_v3 = vadd.f32 %v1649_v54, %v1505_v46  ;;  %v1888_v4 = vsel %vm771_vm2, %v1886_v43, %v1887_v47  ;;  %v1890_v12 = vsel %vm771_vm2, %v1887_v47, %v1889_v48 }
  0x3c   : > { %3967 = vst [vmem:[#allocation4_spill] sm:$0xff] %v2805_v57  ;;  %v2813_v13 = vunpack.c.h.bf16 %v2493_v39  ;;  %v2815_v14 = vunpack.c.l.bf16 %v285_v50  ;;  %v2817_v17 = vunpack.c.l.bf16 %v286_v52  ;;  %v2819_v18 = vunpack.c.h.bf16 %v286_v52 }
  0x3d   : > { %v1986_v19 = vadd.f32 %v1888_v4, %v1745_v2  ;;  %v1987_v20 = vadd.f32 %v1890_v12, %v1746_v3  ;;  %v2821_v21 = vunpack.c.l.bf16 %v288_v58  ;;  %v2823_v22 = vunpack.c.l.bf16 %v291_v1 }
  0x3e   : > { %3968 = vst [vmem:[#allocation5_spill] sm:$0xff] %v2815_v14  ;;  %v384_v29 = vmul.f32 %v2799_v44, %v2616_v5  ;;  %v385_v30 = vmul.f32 %v2805_v57, %v2616_v5  ;;  %v457_v31 = vmul.f32 %v2799_v44, %v2618_v6  ;;  %v458_v32 = vmul.f32 %v2805_v57, %v2618_v6 }
  0x3f   : > { %3969 = vst [vmem:[#allocation6_spill] sm:$0xff] %v2819_v18  ;;  %v2021_v33 = vadd.f32 %v2728_v59, %v1986_v19  ;;  %v2022_v34 = vadd.f32 %v2728_v59, %v1987_v20  ;;  %v459_v35 = vmul.f32 %v2618_v6, %v2815_v14  ;;  %v699_v36 = vmul.f32 %v2799_v44, %v2620_v7 }
  0x40   : > { %3970 = vst [vmem:[#allocation7_spill] sm:$0xff] %v2821_v21  ;;  %v570_v37 = vrot.slane %v457_v31, 1  ;;  %v571_v38 = vrot.slane %v458_v32, 1  ;;  %v700_v39 = vmul.f32 %v2805_v57, %v2620_v7  ;;  %v701_v41 = vmul.f32 %v2620_v7, %v2815_v14 }
  0x41   : > { %v2053_v42 = vmax.f32 %v2021_v33, 0.0  ;;  %v2054_v43 = vmax.f32 %v2022_v34, 0.0  ;;  %v573_v45 = vrot.slane %v459_v35, 1  ;;  %v812_v46 = vrot.slane %v699_v36, 2 }
  0x42   : > { %v572_v47 = vsel %vm529_vm1, %v570_v37, %v571_v38  ;;  %v813_v48 = vrot.slane %v700_v39, 2  ;;  %v815_v50 = vrot.slane %v701_v41, 2  ;;  %v933_v52 = vmul.f32 %v2627_v8, %v2817_v17 }
  0x43   : > { %v2081_v53 = vpack.c.bf16 %v2054_v43, %v2053_v42  ;;  %v574_v54 = vsel %vm529_vm1, %v571_v38, %v573_v45  ;;  %v658_v58 = vadd.f32 %v572_v47, %v384_v29  ;;  %v934_v1 = vmul.f32 %v2627_v8, %v2819_v18 }
  0x44   : > { %v659_v2 = vadd.f32 %v574_v54, %v385_v30  ;;  %v814_v3 = vsel %vm771_vm2, %v812_v46, %v813_v48  ;;  %v816_v4 = vsel %vm771_vm2, %v813_v48, %v815_v50  ;;  %v1006_v12 = vmul.f32 %v2629_v9, %v2817_v17 }
  0x45   : > { %2438 = vmatmul.msk.bf16.vlgmr.msra.gmra.mxu1 %vm2098_vm3, %v2081_v53  ;;  %v900_v19 = vadd.f32 %v814_v3, %v658_v58  ;;  %v1007_v20 = vmul.f32 %v2629_v9, %v2819_v18  ;;  %v1008_v29 = vmul.f32 %v2629_v9, %v2821_v21  ;;  %v1247_v31 = vmul.f32 %v2631_v10, %v2817_v17  ;;  %v2494_v58 = vld [vmem:[%s2625_s8 + $0x90] sm:$0xff]  }
  0x46   : > { %v901_v30 = vadd.f32 %v816_v4, %v659_v2  ;;  %v1118_v32 = vrot.slane %v1006_v12, 1  ;;  %v1248_v33 = vmul.f32 %v2631_v10, %v2819_v18  ;;  %v1249_v34 = vmul.f32 %v2631_v10, %v2821_v21 }
  0x47   : > { %v965_v35 = vadd.f32 %v933_v52, %v900_v19  ;;  %v1119_v36 = vrot.slane %v1007_v20, 1  ;;  %v1121_v37 = vrot.slane %v1008_v29, 1  ;;  %v1359_v38 = vrot.slane %v1247_v31, 2  ;;  %v2495_v31 = vld [vmem:[%s2625_s8 + $0xa8] sm:$0xff]  }
  0x48   : > { %v966_v39 = vadd.f32 %v934_v1, %v901_v30  ;;  %v1360_v41 = vrot.slane %v1248_v33, 2  ;;  %v1362_v42 = vrot.slane %v1249_v34, 2  ;;  %v1480_v43 = vmul.f32 %v2808_v0, %v2633_v11 }
  0x49   : > { %v1120_v45 = vsel %vm529_vm1, %v1118_v32, %v1119_v36  ;;  %v1122_v46 = vsel %vm529_vm1, %v1119_v36, %v1121_v37  ;;  %v1481_v47 = vmul.f32 %v2813_v13, %v2633_v11  ;;  %v1553_v48 = vmul.f32 %v2808_v0, %v2638_v15 }
  0x4a   : > { %v1206_v50 = vadd.f32 %v1120_v45, %v965_v35  ;;  %v1207_v52 = vadd.f32 %v1122_v46, %v966_v39  ;;  %v1361_v53 = vsel %vm771_vm2, %v1359_v38, %v1360_v41  ;;  %v1363_v54 = vsel %vm771_vm2, %v1360_v41, %v1362_v42  ;;  %v297_v39 = vld [vmem:[%s2625_s8 + $0x98] sm:$0x1]  ;;  %v298_v41 = vld [vmem:[%s2625_s8 + $0x9c] sm:$0xff]  }
  0x4b   : > { %v1554_v1 = vmul.f32 %v2813_v13, %v2638_v15  ;;  %v1555_v2 = vmul.f32 %v2638_v15, %v2823_v22  ;;  %v1665_v3 = vrot.slane %v1553_v48, 1  ;;  %v1794_v4 = vmul.f32 %v2808_v0, %v2640_v16  ;;  %v300_v48 = vld [vmem:[%s2625_s8 + $0xa4] sm:$0x1] }
  0x4c   : > { %v1447_v12 = vadd.f32 %v1361_v53, %v1206_v50  ;;  %v1448_v19 = vadd.f32 %v1363_v54, %v1207_v52  ;;  %v1795_v20 = vmul.f32 %v2813_v13, %v2640_v16  ;;  %v1796_v29 = vmul.f32 %v2640_v16, %v2823_v22  ;;  %v303_v52 = vld [vmem:[%s2625_s8 + $0xb0] sm:$0x1] }
  0x4d   : > { %v1666_v30 = vrot.slane %v1554_v1, 1  ;;  %v1668_v32 = vrot.slane %v1555_v2, 1  ;;  %v1906_v33 = vrot.slane %v1794_v4, 2  ;;  %v2886_v34 = vunpack.c.l.bf16 %v2494_v58 }
  0x4e   : > { %v1512_v35 = vadd.f32 %v1480_v43, %v1447_v12  ;;  %v1513_v36 = vadd.f32 %v1481_v47, %v1448_v19  ;;  %v1907_v37 = vrot.slane %v1795_v20, 2  ;;  %v1909_v38 = vrot.slane %v1796_v29, 2 }
  0x4f   : > { %3971 = vst [vmem:[#allocation8_spill] sm:$0xff] %v2886_v34  ;;  %v1667_v42 = vsel %vm529_vm1, %v1665_v3, %v1666_v30  ;;  %v1669_v45 = vsel %vm529_vm1, %v1666_v30, %v1668_v32  ;;  %v2892_v46 = vunpack.c.h.bf16 %v2494_v58  ;;  %v2895_v50 = vunpack.c.l.bf16 %v2495_v31 }
  0x50   : > { %v1753_v53 = vadd.f32 %v1667_v42, %v1512_v35  ;;  %v1754_v54 = vadd.f32 %v1669_v45, %v1513_v36  ;;  %v1908_v1 = vsel %vm771_vm2, %v1906_v33, %v1907_v37  ;;  %v1910_v43 = vsel %vm771_vm2, %v1907_v37, %v1909_v38 }
  0x51   : > { %3972 = vst [vmem:[#allocation9_spill] sm:$0xff] %v2892_v46  ;;  %v2900_v47 = vunpack.c.h.bf16 %v2495_v31  ;;  %v2902_v2 = vunpack.c.l.bf16 %v297_v39  ;;  %v2904_v4 = vunpack.c.l.bf16 %v298_v41  ;;  %v2906_v3 = vunpack.c.h.bf16 %v298_v41 }
  0x52   : > { %v1994_v58 = vadd.f32 %v1908_v1, %v1753_v53  ;;  %v1995_v12 = vadd.f32 %v1910_v43, %v1754_v54  ;;  %v2908_v19 = vunpack.c.l.bf16 %v300_v48  ;;  %v2910_v20 = vunpack.c.l.bf16 %v303_v52 }
  0x53   : > { %3973 = vst [vmem:[#allocation10_spill] sm:$0xff] %v2902_v2  ;;  %v392_v29 = vmul.f32 %v2886_v34, %v2616_v5  ;;  %v393_v30 = vmul.f32 %v2892_v46, %v2616_v5  ;;  %v469_v31 = vmul.f32 %v2886_v34, %v2618_v6  ;;  %v470_v32 = vmul.f32 %v2892_v46, %v2618_v6 }
  0x54   : > { %3974 = vst [vmem:[#allocation11_spill] sm:$0xff] %v2904_v4  ;;  %v2029_v33 = vadd.f32 %v2728_v59, %v1994_v58  ;;  %v2030_v35 = vadd.f32 %v2728_v59, %v1995_v12  ;;  %v471_v36 = vmul.f32 %v2618_v6, %v2902_v2  ;;  %v711_v37 = vmul.f32 %v2886_v34, %v2620_v7 }
  0x55   : > { %3975 = vst [vmem:[#allocation12_spill] sm:$0xff] %v2906_v3  ;;  %v590_v38 = vrot.slane %v469_v31, 1  ;;  %v591_v39 = vrot.slane %v470_v32, 1  ;;  %v712_v41 = vmul.f32 %v2892_v46, %v2620_v7  ;;  %v713_v42 = vmul.f32 %v2620_v7, %v2902_v2 }
  0x56   : > { %3976 = vst [vmem:[#allocation13_spill] sm:$0xff] %v2908_v19  ;;  %v2061_v45 = vmax.f32 %v2029_v33, 0.0  ;;  %v2062_v48 = vmax.f32 %v2030_v35, 0.0  ;;  %v593_v52 = vrot.slane %v471_v36, 1  ;;  %v832_v53 = vrot.slane %v711_v37, 2 }
  0x57   : > { %v592_v54 = vsel %vm529_vm1, %v590_v38, %v591_v39  ;;  %v833_v1 = vrot.slane %v712_v41, 2  ;;  %v835_v43 = vrot.slane %v713_v42, 2  ;;  %v941_v58 = vmul.f32 %v2627_v8, %v2904_v4 }
  0x58   : > { %v2085_v12 = vpack.c.bf16 %v2062_v48, %v2061_v45  ;;  %v594_v31 = vsel %vm529_vm1, %v591_v39, %v593_v52  ;;  %v666_v32 = vadd.f32 %v592_v54, %v392_v29  ;;  %v942_v46 = vmul.f32 %v2627_v8, %v2906_v3 }
  0x59   : > { %v667_v34 = vadd.f32 %v594_v31, %v393_v30  ;;  %v834_v33 = vsel %vm771_vm2, %v832_v53, %v833_v1  ;;  %v836_v35 = vsel %vm771_vm2, %v833_v1, %v835_v43  ;;  %v1018_v36 = vmul.f32 %v2629_v9, %v2904_v4 }
  0x5a   : > { %2442 = vmatmul.msk.bf16.vlgmr.msra.gmra.mxu2 %vm2098_vm3, %v2085_v12  ;;  %v908_v37 = vadd.f32 %v834_v33, %v666_v32  ;;  %v1019_v38 = vmul.f32 %v2629_v9, %v2906_v3  ;;  %v1020_v29 = vmul.f32 %v2629_v9, %v2908_v19  ;;  %v1259_v39 = vmul.f32 %v2631_v10, %v2904_v4 }
  0x5b   : > { %v909_v30 = vadd.f32 %v836_v35, %v667_v34  ;;  %v1138_v41 = vrot.slane %v1018_v36, 1  ;;  %v1260_v42 = vmul.f32 %v2631_v10, %v2906_v3  ;;  %v1261_v45 = vmul.f32 %v2631_v10, %v2908_v19 }
  0x5c   : > { %v973_v48 = vadd.f32 %v941_v58, %v908_v37  ;;  %v1139_v52 = vrot.slane %v1019_v38, 1  ;;  %v1141_v53 = vrot.slane %v1020_v29, 1  ;;  %v1379_v54 = vrot.slane %v1259_v39, 2  ;;  %v268_v38 = vld [vmem:[%s2625_s8 + $0x24] sm:$0xff]  }
  0x5d   : > { %v974_v1 = vadd.f32 %v942_v46, %v909_v30  ;;  %v1380_v43 = vrot.slane %v1260_v42, 2  ;;  %v1382_v12 = vrot.slane %v1261_v45, 2  ;;  %v1488_v31 = vmul.f32 %v2895_v50, %v2633_v11 }
  0x5e   : > { %v1140_v34 = vsel %vm529_vm1, %v1138_v41, %v1139_v52  ;;  %v1142_v32 = vsel %vm529_vm1, %v1139_v52, %v1141_v53  ;;  %v1489_v33 = vmul.f32 %v2900_v47, %v2633_v11  ;;  %v1565_v58 = vmul.f32 %v2895_v50, %v2638_v15  ;;  %v270_v53 = vld [vmem:[%s2625_s8 + $0x2c] sm:$0x1] }
  0x5f   : > { %v1214_v35 = vadd.f32 %v1140_v34, %v973_v48  ;;  %v1215_v36 = vadd.f32 %v1142_v32, %v974_v1  ;;  %v1381_v46 = vsel %vm771_vm2, %v1379_v54, %v1380_v43  ;;  %v1383_v37 = vsel %vm771_vm2, %v1380_v43, %v1382_v12 }
  0x60   : > { %v1566_v29 = vmul.f32 %v2900_v47, %v2638_v15  ;;  %v1567_v39 = vmul.f32 %v2638_v15, %v2910_v20  ;;  %v1685_v30 = vrot.slane %v1565_v58, 1  ;;  %v1806_v41 = vmul.f32 %v2895_v50, %v2640_v16 }
  0x61   : > { %v1455_v42 = vadd.f32 %v1381_v46, %v1214_v35  ;;  %v1456_v45 = vadd.f32 %v1383_v37, %v1215_v36  ;;  %v1807_v48 = vmul.f32 %v2900_v47, %v2640_v16  ;;  %v1808_v52 = vmul.f32 %v2640_v16, %v2910_v20 }
  0x62   : > { %v1686_v54 = vrot.slane %v1566_v29, 1  ;;  %v1688_v1 = vrot.slane %v1567_v39, 1  ;;  %v1926_v43 = vrot.slane %v1806_v41, 2  ;;  %v2973_v12 = vunpack.c.l.bf16 %v268_v38 }
  0x63   : > { %v1520_v34 = vadd.f32 %v1488_v31, %v1455_v42  ;;  %v1521_v32 = vadd.f32 %v1489_v33, %v1456_v45  ;;  %v1927_v58 = vrot.slane %v1807_v48, 2  ;;  %v1929_v2 = vrot.slane %v1808_v52, 2 }
  0x64   : > { %v1687_v14 = vsel %vm529_vm1, %v1685_v30, %v1686_v54  ;;  %v1689_v35 = vsel %vm529_vm1, %v1686_v54, %v1688_v1  ;;  %v2977_v36 = vunpack.c.h.bf16 %v268_v38  ;;  %v2979_v46 = vunpack.c.l.bf16 %v270_v53 }
  0x65   : > { %v1761_v37 = vadd.f32 %v1687_v14, %v1520_v34  ;;  %v1762_v57 = vadd.f32 %v1689_v35, %v1521_v32  ;;  %v1928_v29 = vsel %vm771_vm2, %v1926_v43, %v1927_v58  ;;  %v1930_v39 = vsel %vm771_vm2, %v1927_v58, %v1929_v2 }
  0x66   : > { %v370_v31 = vmul.f32 %v2616_v5, %v2645_v23  ;;  %v371_v33 = vmul.f32 %v2616_v5, %v2651_v26  ;;  %v436_v30 = vmul.f32 %v2618_v6, %v2645_v23  ;;  %v437_v38 = vmul.f32 %v2618_v6, %v2651_v26 }
  0x67   : > { %v2002_v41 = vadd.f32 %v1928_v29, %v1761_v37  ;;  %v2003_v42 = vadd.f32 %v1930_v39, %v1762_v57  ;;  %v438_v14 = vmul.f32 %v2618_v6, %v2653_v27  ;;  %v678_v2 = vmul.f32 %v2620_v7, %v2645_v23 }
  0x68   : > { %v535_v45 = vrot.slane %v436_v30, 1  ;;  %v536_v48 = vrot.slane %v437_v38, 1  ;;  %v679_v52 = vmul.f32 %v2620_v7, %v2651_v26  ;;  %v680_v53 = vmul.f32 %v2620_v7, %v2653_v27 }
  0x69   : > { %v2037_v54 = vadd.f32 %v2728_v59, %v2002_v41  ;;  %v2038_v1 = vadd.f32 %v2728_v59, %v2003_v42  ;;  %v538_v43 = vrot.slane %v438_v14, 1  ;;  %v777_v57 = vrot.slane %v678_v2, 2 }
  0x6a   : > { %v537_v34 = vsel %vm529_vm1, %v535_v45, %v536_v48  ;;  %v778_v32 = vrot.slane %v679_v52, 2  ;;  %v780_v58 = vrot.slane %v680_v53, 2  ;;  %v919_v23 = vmul.f32 %v2647_v24, %v2627_v8 }
  0x6b   : > { %v2069_v35 = vmax.f32 %v2037_v54, 0.0  ;;  %v2070_v37 = vmax.f32 %v2038_v1, 0.0  ;;  %v539_v26 = vsel %vm529_vm1, %v536_v48, %v538_v43  ;;  %v644_v29 = vadd.f32 %v537_v34, %v370_v31 }
  0x6c   : > { %v645_v39 = vadd.f32 %v539_v26, %v371_v33  ;;  %v779_v27 = vsel %vm771_vm2, %v777_v57, %v778_v32  ;;  %v781_v30 = vsel %vm771_vm2, %v778_v32, %v780_v58  ;;  %v920_v38 = vmul.f32 %v2649_v25, %v2627_v8 }
  0x6d   : > { %v2089_v41 = vpack.c.bf16 %v2070_v37, %v2069_v35  ;;  %v886_v42 = vadd.f32 %v779_v27, %v644_v29  ;;  %v985_v14 = vmul.f32 %v2647_v24, %v2629_v9  ;;  %v986_v2 = vmul.f32 %v2649_v25, %v2629_v9 }
  0x6e   : > { %v887_v45 = vadd.f32 %v781_v30, %v645_v39  ;;  %v987_v31 = vmul.f32 %v2629_v9, %v2655_v28  ;;  %v1226_v33 = vmul.f32 %v2647_v24, %v2631_v10  ;;  %v1227_v48 = vmul.f32 %v2649_v25, %v2631_v10 }
  0x6f   : > { %2446 = vmatmul.msk.bf16.vlgmr.msra.gmra.mxu3 %vm2098_vm3, %v2089_v41  ;;  %v951_v52 = vadd.f32 %v919_v23, %v886_v42  ;;  %v1083_v53 = vrot.slane %v985_v14, 1  ;;  %v1084_v54 = vrot.slane %v986_v2, 1  ;;  %v1228_v1 = vmul.f32 %v2631_v10, %v2655_v28  ;;  %v280_v14 = vld [vmem:[%s2625_s8 + $0x54] sm:$0xff]  }
  0x70   : > { %v952_v43 = vadd.f32 %v920_v38, %v887_v45  ;;  %v1086_v57 = vrot.slane %v987_v31, 1  ;;  %v1324_v34 = vrot.slane %v1226_v33, 2  ;;  %v1325_v32 = vrot.slane %v1227_v48, 2 }
  0x71   : > { %v1085_v58 = vsel %vm529_vm1, %v1083_v53, %v1084_v54  ;;  %v1327_v35 = vrot.slane %v1228_v1, 2  ;;  %v1466_v37 = vmul.f32 %v2633_v11, %v2973_v12  ;;  %v1467_v26 = vmul.f32 %v2633_v11, %v2977_v36  ;;  %v282_v1 = vld [vmem:[%s2625_s8 + $0x5c] sm:$0x1] }
  0x72   : > { %v1087_v23 = vsel %vm529_vm1, %v1084_v54, %v1086_v57  ;;  %v1192_v29 = vadd.f32 %v1085_v58, %v951_v52  ;;  %v1326_v39 = vsel %vm771_vm2, %v1324_v34, %v1325_v32  ;;  %v1532_v27 = vmul.f32 %v2638_v15, %v2973_v12 }
  0x73   : > { %v1193_v30 = vadd.f32 %v1087_v23, %v952_v43  ;;  %v1328_v38 = vsel %vm771_vm2, %v1325_v32, %v1327_v35  ;;  %v1533_v41 = vmul.f32 %v2638_v15, %v2977_v36  ;;  %v1534_v42 = vmul.f32 %v2638_v15, %v2979_v46 }
  0x74   : > { %v1433_v2 = vadd.f32 %v1326_v39, %v1192_v29  ;;  %v1630_v45 = vrot.slane %v1532_v27, 1  ;;  %v1773_v31 = vmul.f32 %v2640_v16, %v2973_v12  ;;  %v1774_v33 = vmul.f32 %v2640_v16, %v2977_v36 }
  0x75   : > { %v1434_v48 = vadd.f32 %v1328_v38, %v1193_v30  ;;  %v1631_v52 = vrot.slane %v1533_v41, 1  ;;  %v1633_v53 = vrot.slane %v1534_v42, 1  ;;  %v1775_v54 = vmul.f32 %v2640_v16, %v2979_v46 }
  0x76   : > { %v1498_v43 = vadd.f32 %v1466_v37, %v1433_v2  ;;  %v1871_v57 = vrot.slane %v1773_v31, 2  ;;  %v1872_v34 = vrot.slane %v1774_v33, 2  ;;  %v3044_v32 = vunpack.c.l.bf16 %v280_v14 }
  0x77   : > { %v1499_v58 = vadd.f32 %v1467_v26, %v1434_v48  ;;  %v1632_v35 = vsel %vm529_vm1, %v1630_v45, %v1631_v52  ;;  %v1634_v23 = vsel %vm529_vm1, %v1631_v52, %v1633_v53  ;;  %v1874_v29 = vrot.slane %v1775_v54, 2 }
  0x78   : > { %v1739_v39 = vadd.f32 %v1632_v35, %v1498_v43  ;;  %v1873_v27 = vsel %vm771_vm2, %v1871_v57, %v1872_v34  ;;  %v3049_v30 = vunpack.c.h.bf16 %v280_v14  ;;  %v3051_v38 = vunpack.c.l.bf16 %v282_v1 }
  0x79   : > { %v1740_v41 = vadd.f32 %v1634_v23, %v1499_v58  ;;  %v1875_v37 = vsel %vm771_vm2, %v1872_v34, %v1874_v29  ;;  %v378_v42 = vmul.f32 %v2616_v5, %v2730_v60  ;;  %v379_v26 = vmul.f32 %v2616_v5, %v2732_v61 }
  0x7a   : > { %v1980_v2 = vadd.f32 %v1873_v27, %v1739_v39  ;;  %v448_v45 = vmul.f32 %v2618_v6, %v2730_v60  ;;  %v449_v31 = vmul.f32 %v2618_v6, %v2732_v61  ;;  %v450_v14 = vmul.f32 %v2618_v6, %v2734_v62 }
  0x7b   : > { %v1981_v33 = vadd.f32 %v1875_v37, %v1740_v41  ;;  %v690_v48 = vmul.f32 %v2620_v7, %v2730_v60  ;;  %v691_v52 = vmul.f32 %v2620_v7, %v2732_v61  ;;  %v692_v53 = vmul.f32 %v2620_v7, %v2734_v62 }
  0x7c   : > { %v2015_v54 = vadd.f32 %v2728_v59, %v1980_v2  ;;  %v555_v1 = vrot.slane %v448_v45, 1  ;;  %v556_v43 = vrot.slane %v449_v31, 1  ;;  %v558_v57 = vrot.slane %v450_v14, 1 }
  0x7d   : > { %v2016_v34 = vadd.f32 %v2728_v59, %v1981_v33  ;;  %v797_v58 = vrot.slane %v690_v48, 2  ;;  %v798_v35 = vrot.slane %v691_v52, 2  ;;  %v800_v23 = vrot.slane %v692_v53, 2 }
  0x7e   : > { %v2047_v29 = vmax.f32 %v2015_v54, 0.0  ;;  %v557_v39 = vsel %vm529_vm1, %v555_v1, %v556_v43  ;;  %v559_v27 = vsel %vm529_vm1, %v556_v43, %v558_v57  ;;  %v927_v41 = vmul.f32 %v2716_v51, %v2627_v8 }
  0x7f   : > { %v2048_v37 = vmax.f32 %v2016_v34, 0.0  ;;  %v652_v62 = vadd.f32 %v557_v39, %v378_v42  ;;  %v653_v61 = vadd.f32 %v559_v27, %v379_v26  ;;  %v799_v2 = vsel %vm771_vm2, %v797_v58, %v798_v35 }
  0x80   : > { %v801_v45 = vsel %vm771_vm2, %v798_v35, %v800_v23  ;;  %v928_v31 = vmul.f32 %v2721_v55, %v2627_v8  ;;  %v997_v14 = vmul.f32 %v2716_v51, %v2629_v9  ;;  %v998_v33 = vmul.f32 %v2721_v55, %v2629_v9 }
  0x81   : > { %v2078_v48 = vpack.c.bf16 %v2048_v37, %v2047_v29  ;;  %v894_v52 = vadd.f32 %v799_v2, %v652_v62  ;;  %v895_v53 = vadd.f32 %v801_v45, %v653_v61  ;;  %v999_v42 = vmul.f32 %v2629_v9, %v2736_v63 }
  0x82   : > { %v1103_v26 = vrot.slane %v997_v14, 1  ;;  %v1104_v54 = vrot.slane %v998_v33, 1  ;;  %v1238_v1 = vmul.f32 %v2716_v51, %v2631_v10  ;;  %v1239_v43 = vmul.f32 %v2721_v55, %v2631_v10 }
  0x83   : > { %2435 = vmatmul.msk.bf16.gmra.mxu0 %vm2098_vm3, %v2078_v48  ;;  %v959_v57 = vadd.f32 %v927_v41, %v894_v52  ;;  %v960_v34 = vadd.f32 %v928_v31, %v895_v53  ;;  %v1106_v58 = vrot.slane %v999_v42, 1  ;;  %v1240_v62 = vmul.f32 %v2631_v10, %v2736_v63  ;;  %v292_v42 = vld [vmem:[%s2625_s8 + $0x84] sm:$0xff]  }
  0x84   : > { %v1105_v61 = vsel %vm529_vm1, %v1103_v26, %v1104_v54  ;;  %v1344_v35 = vrot.slane %v1238_v1, 2  ;;  %v1345_v23 = vrot.slane %v1239_v43, 2  ;;  %v1474_v29 = vmul.f32 %v2633_v11, %v3044_v32 }
  0x85   : > { %v1107_v39 = vsel %vm529_vm1, %v1104_v54, %v1106_v58  ;;  %v1200_v27 = vadd.f32 %v1105_v61, %v959_v57  ;;  %v1347_v37 = vrot.slane %v1240_v62, 2  ;;  %v1475_v41 = vmul.f32 %v2633_v11, %v3049_v30  ;;  %v294_v61 = vld [vmem:[%s2625_s8 + $0x8c] sm:$0x1] }
  0x86   : > { %v1201_v2 = vadd.f32 %v1107_v39, %v960_v34  ;;  %v1346_v45 = vsel %vm771_vm2, %v1344_v35, %v1345_v23  ;;  %v1544_v31 = vmul.f32 %v2638_v15, %v3044_v32  ;;  %v1545_v14 = vmul.f32 %v2638_v15, %v3049_v30 }
  0x87   : > { %v1348_v33 = vsel %vm771_vm2, %v1345_v23, %v1347_v37  ;;  %v1441_v48 = vadd.f32 %v1346_v45, %v1200_v27  ;;  %v1546_v52 = vmul.f32 %v2638_v15, %v3051_v38  ;;  %v1785_v53 = vmul.f32 %v2640_v16, %v3044_v32 }
  0x88   : > { %v1442_v26 = vadd.f32 %v1348_v33, %v1201_v2  ;;  %v1650_v54 = vrot.slane %v1544_v31, 1  ;;  %v1651_v1 = vrot.slane %v1545_v14, 1  ;;  %v1786_v43 = vmul.f32 %v2640_v16, %v3049_v30 }
  0x89   : > { %v1506_v57 = vadd.f32 %v1474_v29, %v1441_v48  ;;  %v1653_v34 = vrot.slane %v1546_v52, 1  ;;  %v1787_v58 = vmul.f32 %v2640_v16, %v3051_v38  ;;  %v1891_v62 = vrot.slane %v1785_v53, 2 }
  0x8a   : > { %v1507_v35 = vadd.f32 %v1475_v41, %v1442_v26  ;;  %v1652_v23 = vsel %vm529_vm1, %v1650_v54, %v1651_v1  ;;  %v1892_v39 = vrot.slane %v1786_v43, 2  ;;  %v3116_v27 = vunpack.c.l.bf16 %v292_v42 }
  0x8b   : > { %v1654_v37 = vsel %vm529_vm1, %v1651_v1, %v1653_v34  ;;  %v1747_v2 = vadd.f32 %v1652_v23, %v1506_v57  ;;  %v1894_v45 = vrot.slane %v1787_v58, 2  ;;  %v3119_v31 = vunpack.c.h.bf16 %v292_v42 }
  0x8c   : > { %v1748_v14 = vadd.f32 %v1654_v37, %v1507_v35  ;;  %v1893_v29 = vsel %vm771_vm2, %v1891_v62, %v1892_v39  ;;  %v3122_v33 = vunpack.c.l.bf16 %v294_v61  ;;  %v386_v48 = vmul.f32 %v2616_v5, %v2817_v17 }
  0x8d   : > { %v1895_v41 = vsel %vm771_vm2, %v1892_v39, %v1894_v45  ;;  %v1988_v52 = vadd.f32 %v1893_v29, %v1747_v2  ;;  %v387_v53 = vmul.f32 %v2616_v5, %v2819_v18  ;;  %v460_v26 = vmul.f32 %v2618_v6, %v2817_v17 }
  0x8e   : > { %v1989_v54 = vadd.f32 %v1895_v41, %v1748_v14  ;;  %v461_v42 = vmul.f32 %v2618_v6, %v2819_v18  ;;  %v462_v1 = vmul.f32 %v2618_v6, %v2821_v21  ;;  %v702_v43 = vmul.f32 %v2620_v7, %v2817_v17 }
  0x8f   : > { %v2023_v57 = vadd.f32 %v2728_v59, %v1988_v52  ;;  %v575_v34 = vrot.slane %v460_v26, 1  ;;  %v703_v58 = vmul.f32 %v2620_v7, %v2819_v18  ;;  %v704_v62 = vmul.f32 %v2620_v7, %v2821_v21 }
  0x90   : > { %v2024_v61 = vadd.f32 %v2728_v59, %v1989_v54  ;;  %v576_v35 = vrot.slane %v461_v42, 1  ;;  %v578_v23 = vrot.slane %v462_v1, 1  ;;  %v817_v39 = vrot.slane %v702_v43, 2 }
  0x91   : > { %v2055_v37 = vmax.f32 %v2023_v57, 0.0  ;;  %v818_v2 = vrot.slane %v703_v58, 2  ;;  %v820_v45 = vrot.slane %v704_v62, 2  ;;  %v935_v14 = vmul.f32 %v2808_v0, %v2627_v8 }
  0x92   : > { %v2056_v29 = vmax.f32 %v2024_v61, 0.0  ;;  %v577_v41 = vsel %vm529_vm1, %v575_v34, %v576_v35  ;;  %v579_v52 = vsel %vm529_vm1, %v576_v35, %v578_v23  ;;  %v936_v26 = vmul.f32 %v2813_v13, %v2627_v8 }
  0x93   : > { %v660_v21 = vadd.f32 %v577_v41, %v386_v48  ;;  %v661_v18 = vadd.f32 %v579_v52, %v387_v53  ;;  %v819_v59 = vsel %vm771_vm2, %v817_v39, %v818_v2  ;;  %v821_v54 = vsel %vm771_vm2, %v818_v2, %v820_v45 }
  0x94   : > { %v2082_v42 = vpack.c.bf16 %v2056_v29, %v2055_v37  ;;  %v1009_v1 = vmul.f32 %v2808_v0, %v2629_v9  ;;  %v1010_v43 = vmul.f32 %v2813_v13, %v2629_v9  ;;  %v1011_v57 = vmul.f32 %v2629_v9, %v2823_v22 }
  0x95   : > { %v902_v34 = vadd.f32 %v819_v59, %v660_v21  ;;  %v903_v58 = vadd.f32 %v821_v54, %v661_v18  ;;  %v1250_v48 = vmul.f32 %v2808_v0, %v2631_v10  ;;  %v1251_v53 = vmul.f32 %v2813_v13, %v2631_v10 }
  0x96   : > { %2439 = vmatmul.msk.bf16.gmra.mxu1 %vm2098_vm3, %v2082_v42  ;;  %v1123_v62 = vrot.slane %v1009_v1, 1  ;;  %v1124_v61 = vrot.slane %v1010_v43, 1  ;;  %v1126_v35 = vrot.slane %v1011_v57, 1  ;;  %v1252_v23 = vmul.f32 %v2631_v10, %v2823_v22 }
  0x97   : > { %v967_v39 = vadd.f32 %v935_v14, %v902_v34  ;;  %v968_v37 = vadd.f32 %v936_v26, %v903_v58  ;;  %v1364_v2 = vrot.slane %v1250_v48, 2  ;;  %v1365_v45 = vrot.slane %v1251_v53, 2  ;;  %v304_v53 = vld [vmem:[%s2625_s8 + $0xb4] sm:$0xff]  }
  0x98   : > { %v1125_v18 = vsel %vm529_vm1, %v1123_v62, %v1124_v61  ;;  %v1127_v21 = vsel %vm529_vm1, %v1124_v61, %v1126_v35  ;;  %v1367_v29 = vrot.slane %v1252_v23, 2  ;;  %v1482_v41 = vmul.f32 %v2633_v11, %v3116_v27 }
  0x99   : > { %v1208_v52 = vadd.f32 %v1125_v18, %v967_v39  ;;  %v1209_v59 = vadd.f32 %v1127_v21, %v968_v37  ;;  %v1366_v54 = vsel %vm771_vm2, %v1364_v2, %v1365_v45  ;;  %v1483_v42 = vmul.f32 %v2633_v11, %v3119_v31  ;;  %v306_v18 = vld [vmem:[%s2625_s8 + $0xbc] sm:$0x1] }
  0x9a   : > { %v1368_v14 = vsel %vm771_vm2, %v1365_v45, %v1367_v29  ;;  %v1556_v26 = vmul.f32 %v2638_v15, %v3116_v27  ;;  %v1557_v1 = vmul.f32 %v2638_v15, %v3119_v31  ;;  %v1558_v43 = vmul.f32 %v2638_v15, %v3122_v33 }
  0x9b   : > { %v1449_v57 = vadd.f32 %v1366_v54, %v1208_v52  ;;  %v1450_v34 = vadd.f32 %v1368_v14, %v1209_v59  ;;  %v1797_v58 = vmul.f32 %v2640_v16, %v3116_v27  ;;  %v1798_v48 = vmul.f32 %v2640_v16, %v3119_v31 }
  0x9c   : > { %v1670_v62 = vrot.slane %v1556_v26, 1  ;;  %v1671_v61 = vrot.slane %v1557_v1, 1  ;;  %v1673_v35 = vrot.slane %v1558_v43, 1  ;;  %v1799_v23 = vmul.f32 %v2640_v16, %v3122_v33 }
  0x9d   : > { %v1514_v39 = vadd.f32 %v1482_v41, %v1449_v57  ;;  %v1515_v37 = vadd.f32 %v1483_v42, %v1450_v34  ;;  %v1911_v2 = vrot.slane %v1797_v58, 2  ;;  %v1912_v45 = vrot.slane %v1798_v48, 2 }
  0x9e   : > { %v1672_v21 = vsel %vm529_vm1, %v1670_v62, %v1671_v61  ;;  %v1674_v29 = vsel %vm529_vm1, %v1671_v61, %v1673_v35  ;;  %v1914_v52 = vrot.slane %v1799_v23, 2  ;;  %v3188_v59 = vunpack.c.l.bf16 %v304_v53 }
  0x9f   : > { %v1755_v54 = vadd.f32 %v1672_v21, %v1514_v39  ;;  %v1756_v14 = vadd.f32 %v1674_v29, %v1515_v37  ;;  %v1913_v26 = vsel %vm771_vm2, %v1911_v2, %v1912_v45  ;;  %v3191_v1 = vunpack.c.h.bf16 %v304_v53  ;;  %v3215_v39 = vld [vmem:[%s3937_s2] ss:$0 sm:$0xff] }
  0xa0   : > { %v1915_v43 = vsel %vm771_vm2, %v1912_v45, %v1914_v52  ;;  %v3194_v41 = vunpack.c.l.bf16 %v306_v18  ;;  %v394_v42 = vmul.f32 %v2616_v5, %v2904_v4  ;;  %v395_v57 = vmul.f32 %v2616_v5, %v2906_v3 }
  0xa1   : > { %v1996_v34 = vadd.f32 %v1913_v26, %v1755_v54  ;;  %v1997_v58 = vadd.f32 %v1915_v43, %v1756_v14  ;;  %v472_v48 = vmul.f32 %v2618_v6, %v2904_v4  ;;  %v473_v62 = vmul.f32 %v2618_v6, %v2906_v3 }
  0xa2   : > { %v474_v53 = vmul.f32 %v2618_v6, %v2908_v19  ;;  %v714_v61 = vmul.f32 %v2620_v7, %v2904_v4  ;;  %v715_v35 = vmul.f32 %v2620_v7, %v2906_v3  ;;  %v716_v23 = vmul.f32 %v2620_v7, %v2908_v19 }
  0xa3   : > { %v2031_v37 = vadd.f32 %v3215_v39, %v1996_v34  ;;  %v2032_v2 = vadd.f32 %v3215_v39, %v1997_v58  ;;  %v595_v45 = vrot.slane %v472_v48, 1  ;;  %v596_v18 = vrot.slane %v473_v62, 1 }
  0xa4   : > { %v598_v21 = vrot.slane %v474_v53, 1  ;;  %v837_v29 = vrot.slane %v714_v61, 2  ;;  %v838_v52 = vrot.slane %v715_v35, 2  ;;  %v840_v54 = vrot.slane %v716_v23, 2 }
  0xa5   : > { %v2063_v14 = vmax.f32 %v2031_v37, 0.0  ;;  %v2064_v26 = vmax.f32 %v2032_v2, 0.0  ;;  %v597_v43 = vsel %vm529_vm1, %v595_v45, %v596_v18  ;;  %v943_v19 = vmul.f32 %v2895_v50, %v2627_v8 }
  0xa6   : > { %v599_v3 = vsel %vm529_vm1, %v596_v18, %v598_v21  ;;  %v668_v4 = vadd.f32 %v597_v43, %v394_v42  ;;  %v839_v34 = vsel %vm771_vm2, %v837_v29, %v838_v52  ;;  %v841_v58 = vsel %vm771_vm2, %v838_v52, %v840_v54 }
  0xa7   : > { %v2086_v48 = vpack.c.bf16 %v2064_v26, %v2063_v14  ;;  %v669_v62 = vadd.f32 %v599_v3, %v395_v57  ;;  %v944_v53 = vmul.f32 %v2900_v47, %v2627_v8  ;;  %v1021_v61 = vmul.f32 %v2895_v50, %v2629_v9 }
  0xa8   : > { %v910_v35 = vadd.f32 %v839_v34, %v668_v4  ;;  %v1022_v23 = vmul.f32 %v2900_v47, %v2629_v9  ;;  %v1023_v37 = vmul.f32 %v2629_v9, %v2910_v20  ;;  %v1262_v42 = vmul.f32 %v2895_v50, %v2631_v10 }
  0xa9   : > { %2443 = vmatmul.msk.bf16.gmra.mxu2 %vm2098_vm3, %v2086_v48  ;;  %v911_v2 = vadd.f32 %v841_v58, %v669_v62  ;;  %v1143_v3 = vrot.slane %v1021_v61, 1  ;;  %v1263_v57 = vmul.f32 %v2900_v47, %v2631_v10  ;;  %v1264_v45 = vmul.f32 %v2631_v10, %v2910_v20 }
  0xaa   : > { %v975_v4 = vadd.f32 %v943_v19, %v910_v35  ;;  %v1144_v18 = vrot.slane %v1022_v23, 1  ;;  %v1146_v21 = vrot.slane %v1023_v37, 1  ;;  %v1384_v29 = vrot.slane %v1262_v42, 2 }
  0xab   : > { %v976_v52 = vadd.f32 %v944_v53, %v911_v2  ;;  %v1385_v54 = vrot.slane %v1263_v57, 2  ;;  %v1387_v14 = vrot.slane %v1264_v45, 2  ;;  %v1490_v26 = vmul.f32 %v2633_v11, %v3188_v59 }
  0xac   : > { %v1145_v43 = vsel %vm529_vm1, %v1143_v3, %v1144_v18  ;;  %v1147_v34 = vsel %vm529_vm1, %v1144_v18, %v1146_v21  ;;  %v1491_v58 = vmul.f32 %v2633_v11, %v3191_v1  ;;  %v1568_v48 = vmul.f32 %v2638_v15, %v3188_v59 }
  0xad   : > { %v1216_v19 = vadd.f32 %v1145_v43, %v975_v4  ;;  %v1217_v62 = vadd.f32 %v1147_v34, %v976_v52  ;;  %v1386_v61 = vsel %vm771_vm2, %v1384_v29, %v1385_v54  ;;  %v1388_v53 = vsel %vm771_vm2, %v1385_v54, %v1387_v14 }
  0xae   : > { %v1569_v35 = vmul.f32 %v2638_v15, %v3191_v1  ;;  %v1570_v23 = vmul.f32 %v2638_v15, %v3194_v41  ;;  %v1690_v37 = vrot.slane %v1568_v48, 1  ;;  %v1809_v42 = vmul.f32 %v2640_v16, %v3188_v59 }
  0xaf   : > { %v1457_v2 = vadd.f32 %v1386_v61, %v1216_v19  ;;  %v1458_v3 = vadd.f32 %v1388_v53, %v1217_v62  ;;  %v1810_v57 = vmul.f32 %v2640_v16, %v3191_v1  ;;  %v1811_v45 = vmul.f32 %v2640_v16, %v3194_v41 }
  0xb0   : > { %v1691_v4 = vrot.slane %v1569_v35, 1  ;;  %v1693_v18 = vrot.slane %v1570_v23, 1  ;;  %v1931_v21 = vrot.slane %v1809_v42, 2  ;;  %v372_v29 = vmul.f32 %v2647_v24, %v2616_v5 }
  0xb1   : > { %v1522_v52 = vadd.f32 %v1490_v26, %v1457_v2  ;;  %v1523_v54 = vadd.f32 %v1491_v58, %v1458_v3  ;;  %v1932_v14 = vrot.slane %v1810_v57, 2  ;;  %v1934_v43 = vrot.slane %v1811_v45, 2 }
  0xb2   : > { %v1692_v34 = vsel %vm529_vm1, %v1690_v37, %v1691_v4  ;;  %v1694_v48 = vsel %vm529_vm1, %v1691_v4, %v1693_v18  ;;  %v373_v19 = vmul.f32 %v2649_v25, %v2616_v5  ;;  %v439_v62 = vmul.f32 %v2647_v24, %v2618_v6 }
  0xb3   : > { %v1763_v61 = vadd.f32 %v1692_v34, %v1522_v52  ;;  %v1764_v53 = vadd.f32 %v1694_v48, %v1523_v54  ;;  %v1933_v35 = vsel %vm771_vm2, %v1931_v21, %v1932_v14  ;;  %v1935_v23 = vsel %vm771_vm2, %v1932_v14, %v1934_v43 }
  0xb4   : > { %v440_v26 = vmul.f32 %v2649_v25, %v2618_v6  ;;  %v441_v58 = vmul.f32 %v2618_v6, %v2655_v28  ;;  %v540_v37 = vrot.slane %v439_v62, 1  ;;  %v681_v42 = vmul.f32 %v2647_v24, %v2620_v7 }
  0xb5   : > { %v2004_v2 = vadd.f32 %v1933_v35, %v1763_v61  ;;  %v2005_v3 = vadd.f32 %v1935_v23, %v1764_v53  ;;  %v682_v57 = vmul.f32 %v2649_v25, %v2620_v7  ;;  %v683_v45 = vmul.f32 %v2620_v7, %v2655_v28 }
  0xb6   : > { %v541_v4 = vrot.slane %v440_v26, 1  ;;  %v543_v18 = vrot.slane %v441_v58, 1  ;;  %v782_v21 = vrot.slane %v681_v42, 2  ;;  %v921_v52 = vmul.f32 %v2627_v8, %v2973_v12 }
  0xb7   : > { %v2039_v54 = vadd.f32 %v3215_v39, %v2004_v2  ;;  %v2040_v14 = vadd.f32 %v3215_v39, %v2005_v3  ;;  %v783_v43 = vrot.slane %v682_v57, 2  ;;  %v785_v24 = vrot.slane %v683_v45, 2 }
  0xb8   : > { %v542_v34 = vsel %vm529_vm1, %v540_v37, %v541_v4  ;;  %v544_v48 = vsel %vm529_vm1, %v541_v4, %v543_v18  ;;  %v922_v25 = vmul.f32 %v2627_v8, %v2977_v36  ;;  %v988_v28 = vmul.f32 %v2629_v9, %v2973_v12 }
  0xb9   : > { %v2071_v62 = vmax.f32 %v2039_v54, 0.0  ;;  %v2072_v61 = vmax.f32 %v2040_v14, 0.0  ;;  %v646_v53 = vadd.f32 %v542_v34, %v372_v29  ;;  %v647_v35 = vadd.f32 %v544_v48, %v373_v19 }
  0xba   : > { %v784_v23 = vsel %vm771_vm2, %v782_v21, %v783_v43  ;;  %v786_v26 = vsel %vm771_vm2, %v783_v43, %v785_v24  ;;  %v989_v58 = vmul.f32 %v2629_v9, %v2977_v36  ;;  %v990_v37 = vmul.f32 %v2629_v9, %v2979_v46 }
  0xbb   : > { %v2090_v42 = vpack.c.bf16 %v2072_v61, %v2071_v62  ;;  %v888_v2 = vadd.f32 %v784_v23, %v646_v53  ;;  %v889_v3 = vadd.f32 %v786_v26, %v647_v35  ;;  %v1088_v57 = vrot.slane %v988_v28, 1 }
  0xbc   : > { %v1089_v45 = vrot.slane %v989_v58, 1  ;;  %v1091_v4 = vrot.slane %v990_v37, 1  ;;  %v1229_v29 = vmul.f32 %v2631_v10, %v2973_v12  ;;  %v1230_v19 = vmul.f32 %v2631_v10, %v2977_v36 }
  0xbd   : > { %2447 = vmatmul.msk.bf16.gmra.mxu3 %vm2098_vm3, %v2090_v42  ;;  %v953_v18 = vadd.f32 %v921_v52, %v888_v2  ;;  %v954_v21 = vadd.f32 %v922_v25, %v889_v3  ;;  %v1231_v54 = vmul.f32 %v2631_v10, %v2979_v46  ;;  %v1468_v14 = vmul.f32 %v2707_v40, %v2633_v11 }
  0xbe   : > { %v1090_v43 = vsel %vm529_vm1, %v1088_v57, %v1089_v45  ;;  %v1092_v24 = vsel %vm529_vm1, %v1089_v45, %v1091_v4  ;;  %v1329_v34 = vrot.slane %v1229_v29, 2  ;;  %v1330_v48 = vrot.slane %v1230_v19, 2 }
  0xbf   : > { %v1194_v28 = vadd.f32 %v1090_v43, %v953_v18  ;;  %v1195_v62 = vadd.f32 %v1092_v24, %v954_v21  ;;  %v1332_v61 = vrot.slane %v1231_v54, 2  ;;  %v1469_v53 = vmul.f32 %v2713_v49, %v2633_v11 }
  0xc0   : > { %v1331_v52 = vsel %vm771_vm2, %v1329_v34, %v1330_v48  ;;  %v1535_v25 = vmul.f32 %v2707_v40, %v2638_v15  ;;  %v1536_v35 = vmul.f32 %v2713_v49, %v2638_v15  ;;  %v1537_v23 = vmul.f32 %v2638_v15, %v2723_v56 }
  0xc1   : > { %v1333_v26 = vsel %vm771_vm2, %v1330_v48, %v1332_v61  ;;  %v1435_v58 = vadd.f32 %v1331_v52, %v1194_v28  ;;  %v1776_v37 = vmul.f32 %v2707_v40, %v2640_v16  ;;  %v1777_v42 = vmul.f32 %v2713_v49, %v2640_v16 }
  0xc2   : > { %v1436_v2 = vadd.f32 %v1333_v26, %v1195_v62  ;;  %v1635_v3 = vrot.slane %v1535_v25, 1  ;;  %v1636_v57 = vrot.slane %v1536_v35, 1  ;;  %v1638_v45 = vrot.slane %v1537_v23, 1 }
  0xc3   : > { %v1500_v4 = vadd.f32 %v1468_v14, %v1435_v58  ;;  %v1778_v29 = vmul.f32 %v2640_v16, %v2723_v56  ;;  %v1876_v19 = vrot.slane %v1776_v37, 2  ;;  %v1877_v18 = vrot.slane %v1777_v42, 2 }
  0xc4   : > { %v1501_v21 = vadd.f32 %v1469_v53, %v1436_v2  ;;  %v1637_v54 = vsel %vm529_vm1, %v1635_v3, %v1636_v57  ;;  %v1639_v43 = vsel %vm529_vm1, %v1636_v57, %v1638_v45  ;;  %v380_v24 = vmul.f32 %v2716_v51, %v2616_v5 }
  0xc5   : > { %v1741_v34 = vadd.f32 %v1637_v54, %v1500_v4  ;;  %v1878_v48 = vsel %vm771_vm2, %v1876_v19, %v1877_v18  ;;  %v1879_v28 = vrot.slane %v1778_v29, 2  ;;  %v381_v14 = vmul.f32 %v2721_v55, %v2616_v5 }
  0xc6   : > { %v1742_v62 = vadd.f32 %v1639_v43, %v1501_v21  ;;  %v451_v61 = vmul.f32 %v2716_v51, %v2618_v6  ;;  %v452_v53 = vmul.f32 %v2721_v55, %v2618_v6  ;;  %v453_v52 = vmul.f32 %v2618_v6, %v2736_v63 }
  0xc7   : > { %v1880_v25 = vsel %vm771_vm2, %v1877_v18, %v1879_v28  ;;  %v1982_v35 = vadd.f32 %v1878_v48, %v1741_v34  ;;  %v693_v23 = vmul.f32 %v2716_v51, %v2620_v7  ;;  %v694_v26 = vmul.f32 %v2721_v55, %v2620_v7 }
  0xc8   : > { %v1983_v58 = vadd.f32 %v1880_v25, %v1742_v62  ;;  %v560_v37 = vrot.slane %v451_v61, 1  ;;  %v561_v42 = vrot.slane %v452_v53, 1  ;;  %v563_v2 = vrot.slane %v453_v52, 1 }
  0xc9   : > { %v2017_v3 = vadd.f32 %v3215_v39, %v1982_v35  ;;  %v695_v57 = vmul.f32 %v2620_v7, %v2736_v63  ;;  %v802_v45 = vrot.slane %v693_v23, 2  ;;  %v803_v4 = vrot.slane %v694_v26, 2 }
  0xca   : > { %v2018_v29 = vadd.f32 %v3215_v39, %v1983_v58  ;;  %v562_v19 = vsel %vm529_vm1, %v560_v37, %v561_v42  ;;  %v564_v51 = vsel %vm529_vm1, %v561_v42, %v563_v2  ;;  %v929_v55 = vmul.f32 %v2627_v8, %v3044_v32 }
  0xcb   : > { %v2049_v18 = vmax.f32 %v2017_v3, 0.0  ;;  %v654_v21 = vadd.f32 %v562_v19, %v380_v24  ;;  %v655_v54 = vadd.f32 %v564_v51, %v381_v14  ;;  %v804_v43 = vsel %vm771_vm2, %v802_v45, %v803_v4  ;;  %v3977_v19 = vld [vmem:[#allocation4_spill] sm:$0xff] }
  0xcc   : > { %v2050_v34 = vmax.f32 %v2018_v29, 0.0  ;;  %v805_v48 = vrot.slane %v695_v57, 2  ;;  %v930_v63 = vmul.f32 %v2627_v8, %v3049_v30  ;;  %v1000_v28 = vmul.f32 %v2629_v9, %v3044_v32 }
  0xcd   : > { %v896_v62 = vadd.f32 %v804_v43, %v654_v21  ;;  %v1001_v61 = vmul.f32 %v2629_v9, %v3049_v30  ;;  %v1002_v53 = vmul.f32 %v2629_v9, %v3051_v38  ;;  %v1241_v24 = vmul.f32 %v2631_v10, %v3044_v32 }
  0xce   : > { %v2079_v14 = vpack.c.bf16 %v2050_v34, %v2049_v18  ;;  %v806_v52 = vsel %vm771_vm2, %v803_v4, %v805_v48  ;;  %v1108_v25 = vrot.slane %v1000_v28, 1  ;;  %v1242_v35 = vmul.f32 %v2631_v10, %v3049_v30  ;;  %v3978_v48 = vld [vmem:[#allocation5_spill] sm:$0xff] }
  0xcf   : > { %v897_v23 = vadd.f32 %v806_v52, %v655_v54  ;;  %v961_v26 = vadd.f32 %v929_v55, %v896_v62  ;;  %v1109_v58 = vrot.slane %v1001_v61, 1  ;;  %v1111_v37 = vrot.slane %v1002_v53, 1 }
  0xd0   : > { %2436 = vmatmul.msk.bf16.gmra.mxu0 %vm2098_vm3, %v2079_v14  ;;  %v1243_v42 = vmul.f32 %v2631_v10, %v3051_v38  ;;  %v1349_v2 = vrot.slane %v1241_v24, 2  ;;  %v1350_v3 = vrot.slane %v1242_v35, 2  ;;  %v1476_v57 = vmul.f32 %v2799_v44, %v2633_v11 }
  0xd1   : > { %v962_v45 = vadd.f32 %v930_v63, %v897_v23  ;;  %v1110_v4 = vsel %vm529_vm1, %v1108_v25, %v1109_v58  ;;  %v1112_v29 = vsel %vm529_vm1, %v1109_v58, %v1111_v37  ;;  %v1477_v51 = vmul.f32 %v3977_v19, %v2633_v11 }
  0xd2   : > { %v1202_v55 = vadd.f32 %v1110_v4, %v961_v26  ;;  %v1351_v18 = vsel %vm771_vm2, %v1349_v2, %v1350_v3  ;;  %v1352_v21 = vrot.slane %v1243_v42, 2  ;;  %v1547_v54 = vmul.f32 %v2799_v44, %v2638_v15 }
  0xd3   : > { %v1203_v43 = vadd.f32 %v1112_v29, %v962_v45  ;;  %v1548_v34 = vmul.f32 %v3977_v19, %v2638_v15  ;;  %v1549_v63 = vmul.f32 %v2638_v15, %v3978_v48  ;;  %v1788_v28 = vmul.f32 %v2799_v44, %v2640_v16 }
  0xd4   : > { %v1353_v62 = vsel %vm771_vm2, %v1350_v3, %v1352_v21  ;;  %v1443_v61 = vadd.f32 %v1351_v18, %v1202_v55  ;;  %v1655_v53 = vrot.slane %v1547_v54, 1  ;;  %v1789_v24 = vmul.f32 %v3977_v19, %v2640_v16 }
  0xd5   : > { %v1444_v14 = vadd.f32 %v1353_v62, %v1203_v43  ;;  %v1656_v52 = vrot.slane %v1548_v34, 1  ;;  %v1658_v25 = vrot.slane %v1549_v63, 1  ;;  %v1790_v35 = vmul.f32 %v2640_v16, %v3978_v48 }
  0xd6   : > { %v1508_v23 = vadd.f32 %v1476_v57, %v1443_v61  ;;  %v1896_v26 = vrot.slane %v1788_v28, 2  ;;  %v1897_v58 = vrot.slane %v1789_v24, 2  ;;  %v388_v37 = vmul.f32 %v2808_v0, %v2616_v5 }
  0xd7   : > { %v1509_v42 = vadd.f32 %v1477_v51, %v1444_v14  ;;  %v1657_v2 = vsel %vm529_vm1, %v1655_v53, %v1656_v52  ;;  %v1659_v3 = vsel %vm529_vm1, %v1656_v52, %v1658_v25  ;;  %v1899_v45 = vrot.slane %v1790_v35, 2 }
  0xd8   : > { %v1749_v4 = vadd.f32 %v1657_v2, %v1508_v23  ;;  %v1898_v29 = vsel %vm771_vm2, %v1896_v26, %v1897_v58  ;;  %v389_v55 = vmul.f32 %v2813_v13, %v2616_v5  ;;  %v463_v57 = vmul.f32 %v2808_v0, %v2618_v6 }
  0xd9   : > { %v1750_v18 = vadd.f32 %v1659_v3, %v1509_v42  ;;  %v1900_v21 = vsel %vm771_vm2, %v1897_v58, %v1899_v45  ;;  %v464_v51 = vmul.f32 %v2813_v13, %v2618_v6  ;;  %v465_v54 = vmul.f32 %v2618_v6, %v2823_v22 }
  0xda   : > { %v1990_v43 = vadd.f32 %v1898_v29, %v1749_v4  ;;  %v580_v34 = vrot.slane %v463_v57, 1  ;;  %v705_v63 = vmul.f32 %v2808_v0, %v2620_v7  ;;  %v706_v28 = vmul.f32 %v2813_v13, %v2620_v7 }
  0xdb   : > { %v1991_v62 = vadd.f32 %v1900_v21, %v1750_v18  ;;  %v581_v61 = vrot.slane %v464_v51, 1  ;;  %v583_v53 = vrot.slane %v465_v54, 1  ;;  %v707_v24 = vmul.f32 %v2620_v7, %v2823_v22 }
  0xdc   : > { %v2025_v14 = vadd.f32 %v3215_v39, %v1990_v43  ;;  %v822_v52 = vrot.slane %v705_v63, 2  ;;  %v823_v25 = vrot.slane %v706_v28, 2  ;;  %v937_v35 = vmul.f32 %v2627_v8, %v3116_v27 }
  0xdd   : > { %v2026_v23 = vadd.f32 %v3215_v39, %v1991_v62  ;;  %v582_v0 = vsel %vm529_vm1, %v580_v34, %v581_v61  ;;  %v584_v26 = vsel %vm529_vm1, %v581_v61, %v583_v53  ;;  %v825_v13 = vrot.slane %v707_v24, 2 }
  0xde   : > { %v2057_v58 = vmax.f32 %v2025_v14, 0.0  ;;  %v662_v42 = vadd.f32 %v582_v0, %v388_v37  ;;  %v663_v2 = vadd.f32 %v584_v26, %v389_v55  ;;  %v824_v3 = vsel %vm771_vm2, %v822_v52, %v823_v25  ;;  %v3979_v14 = vld [vmem:[#allocation8_spill] sm:$0xff] }
  0xdf   : > { %v2058_v22 = vmax.f32 %v2026_v23, 0.0  ;;  %v826_v45 = vsel %vm771_vm2, %v823_v25, %v825_v13  ;;  %v938_v4 = vmul.f32 %v2627_v8, %v3119_v31  ;;  %v1012_v29 = vmul.f32 %v2629_v9, %v3116_v27 }
  0xe0   : > { %v904_v57 = vadd.f32 %v824_v3, %v662_v42  ;;  %v905_v18 = vadd.f32 %v826_v45, %v663_v2  ;;  %v1013_v21 = vmul.f32 %v2629_v9, %v3119_v31  ;;  %v1014_v37 = vmul.f32 %v2629_v9, %v3122_v33 }
  0xe1   : > { %v2083_v55 = vpack.c.bf16 %v2058_v22, %v2057_v58  ;;  %v1128_v51 = vrot.slane %v1012_v29, 1  ;;  %v1253_v54 = vmul.f32 %v2631_v10, %v3116_v27  ;;  %v1254_v43 = vmul.f32 %v2631_v10, %v3119_v31  ;;  %v3981_v22 = vld [vmem:[#allocation10_spill] sm:$0xff] }
  0xe2   : > { %v969_v34 = vadd.f32 %v937_v35, %v904_v57  ;;  %v970_v63 = vadd.f32 %v938_v4, %v905_v18  ;;  %v1129_v28 = vrot.slane %v1013_v21, 1  ;;  %v1131_v62 = vrot.slane %v1014_v37, 1  ;;  %v3980_v35 = vld [vmem:[#allocation9_spill] sm:$0xff]  ;;  %v2496_v57 = vld [vmem:[%s2625_s8 + $0xc0] sm:$0xff]  }
  0xe3   : > { %2440 = vmatmul.msk.bf16.gmra.mxu1 %vm2098_vm3, %v2083_v55  ;;  %v1255_v61 = vmul.f32 %v2631_v10, %v3122_v33  ;;  %v1369_v53 = vrot.slane %v1253_v54, 2  ;;  %v1370_v24 = vrot.slane %v1254_v43, 2  ;;  %v1484_v52 = vmul.f32 %v3979_v14, %v2633_v11 }
  0xe4   : > { %v1130_v25 = vsel %vm529_vm1, %v1128_v51, %v1129_v28  ;;  %v1132_v23 = vsel %vm529_vm1, %v1129_v28, %v1131_v62  ;;  %v1485_v0 = vmul.f32 %v3980_v35, %v2633_v11  ;;  %v1559_v26 = vmul.f32 %v3979_v14, %v2638_v15 }
  0xe5   : > { %v1210_v13 = vadd.f32 %v1130_v25, %v969_v34  ;;  %v1211_v58 = vadd.f32 %v1132_v23, %v970_v63  ;;  %v1371_v42 = vsel %vm771_vm2, %v1369_v53, %v1370_v24  ;;  %v1372_v2 = vrot.slane %v1255_v61, 2  ;;  %v309_v63 = vld [vmem:[%s2625_s8 + $0xc8] sm:$0x1] }
  0xe6   : > { %v1560_v3 = vmul.f32 %v3980_v35, %v2638_v15  ;;  %v1561_v45 = vmul.f32 %v2638_v15, %v3981_v22  ;;  %v1675_v4 = vrot.slane %v1559_v26, 1  ;;  %v1800_v29 = vmul.f32 %v3979_v14, %v2640_v16 }
  0xe7   : > { %v1373_v18 = vsel %vm771_vm2, %v1370_v24, %v1372_v2  ;;  %v1451_v21 = vadd.f32 %v1371_v42, %v1210_v13  ;;  %v1801_v37 = vmul.f32 %v3980_v35, %v2640_v16  ;;  %v1802_v55 = vmul.f32 %v2640_v16, %v3981_v22 }
  0xe8   : > { %v1452_v51 = vadd.f32 %v1373_v18, %v1211_v58  ;;  %v1676_v54 = vrot.slane %v1560_v3, 1  ;;  %v1678_v43 = vrot.slane %v1561_v45, 1  ;;  %v1916_v34 = vrot.slane %v1800_v29, 2 }
  0xe9   : > { %v1516_v28 = vadd.f32 %v1484_v52, %v1451_v21  ;;  %v1917_v62 = vrot.slane %v1801_v37, 2  ;;  %v1919_v61 = vrot.slane %v1802_v55, 2  ;;  %v3451_v53 = vunpack.c.l.bf16 %v2496_v57 }
  0xea   : > { %v1517_v25 = vadd.f32 %v1485_v0, %v1452_v51  ;;  %v1677_v24 = vsel %vm529_vm1, %v1675_v4, %v1676_v54  ;;  %v1679_v23 = vsel %vm529_vm1, %v1676_v54, %v1678_v43  ;;  %v3455_v26 = vunpack.c.h.bf16 %v2496_v57 }
  0xeb   : > { %v1757_v13 = vadd.f32 %v1677_v24, %v1516_v28  ;;  %v1918_v42 = vsel %vm771_vm2, %v1916_v34, %v1917_v62  ;;  %v1920_v58 = vsel %vm771_vm2, %v1917_v62, %v1919_v61  ;;  %v3459_v2 = vunpack.c.l.bf16 %v309_v63 }
  0xec   : > { %v1758_v3 = vadd.f32 %v1679_v23, %v1517_v25  ;;  %v396_v52 = vmul.f32 %v2895_v50, %v2616_v5  ;;  %v397_v0 = vmul.f32 %v2900_v47, %v2616_v5  ;;  %v475_v45 = vmul.f32 %v2895_v50, %v2618_v6 }
  0xed   : > { %v1998_v4 = vadd.f32 %v1918_v42, %v1757_v13  ;;  %v476_v29 = vmul.f32 %v2900_v47, %v2618_v6  ;;  %v477_v57 = vmul.f32 %v2618_v6, %v2910_v20  ;;  %v717_v18 = vmul.f32 %v2895_v50, %v2620_v7 }
  0xee   : > { %v1999_v21 = vadd.f32 %v1920_v58, %v1758_v3  ;;  %v600_v37 = vrot.slane %v475_v45, 1  ;;  %v718_v55 = vmul.f32 %v2900_v47, %v2620_v7  ;;  %v719_v51 = vmul.f32 %v2620_v7, %v2910_v20 }
  0xef   : > { %v2033_v54 = vadd.f32 %v3215_v39, %v1998_v4  ;;  %v601_v43 = vrot.slane %v476_v29, 1  ;;  %v603_v34 = vrot.slane %v477_v57, 1  ;;  %v842_v63 = vrot.slane %v717_v18, 2 }
  0xf0   : > { %v2034_v28 = vadd.f32 %v3215_v39, %v1999_v21  ;;  %v843_v62 = vrot.slane %v718_v55, 2  ;;  %v845_v61 = vrot.slane %v719_v51, 2  ;;  %v945_v50 = vmul.f32 %v2627_v8, %v3188_v59 }
  0xf1   : > { %v2065_v25 = vmax.f32 %v2033_v54, 0.0  ;;  %v602_v24 = vsel %vm529_vm1, %v600_v37, %v601_v43  ;;  %v604_v47 = vsel %vm529_vm1, %v601_v43, %v603_v34  ;;  %v946_v20 = vmul.f32 %v2627_v8, %v3191_v1 }
  0xf2   : > { %v2066_v23 = vmax.f32 %v2034_v28, 0.0  ;;  %v670_v13 = vadd.f32 %v602_v24, %v396_v52  ;;  %v671_v42 = vadd.f32 %v604_v47, %v397_v0  ;;  %v844_v58 = vsel %vm771_vm2, %v842_v63, %v843_v62 }
  0xf3   : > { %v846_v3 = vsel %vm771_vm2, %v843_v62, %v845_v61  ;;  %v1024_v45 = vmul.f32 %v2629_v9, %v3188_v59  ;;  %v1025_v4 = vmul.f32 %v2629_v9, %v3191_v1  ;;  %v1026_v29 = vmul.f32 %v2629_v9, %v3194_v41 }
  0xf4   : > { %v2087_v57 = vpack.c.bf16 %v2066_v23, %v2065_v25  ;;  %v912_v18 = vadd.f32 %v844_v58, %v670_v13  ;;  %v913_v21 = vadd.f32 %v846_v3, %v671_v42  ;;  %v1265_v52 = vmul.f32 %v2631_v10, %v3188_v59 }
  0xf5   : > { %v1148_v0 = vrot.slane %v1024_v45, 1  ;;  %v1149_v37 = vrot.slane %v1025_v4, 1  ;;  %v1151_v55 = vrot.slane %v1026_v29, 1  ;;  %v1266_v51 = vmul.f32 %v2631_v10, %v3191_v1 }
  0xf6   : > { %2444 = vmatmul.msk.bf16.gmra.mxu2 %vm2098_vm3, %v2087_v57  ;;  %v977_v54 = vadd.f32 %v945_v50, %v912_v18  ;;  %v978_v43 = vadd.f32 %v946_v20, %v913_v21  ;;  %v1267_v34 = vmul.f32 %v2631_v10, %v3194_v41  ;;  %v1389_v63 = vrot.slane %v1265_v52, 2 }
  0xf7   : > { %v1150_v28 = vsel %vm529_vm1, %v1148_v0, %v1149_v37  ;;  %v1152_v62 = vsel %vm529_vm1, %v1149_v37, %v1151_v55  ;;  %v1390_v61 = vrot.slane %v1266_v51, 2  ;;  %v1492_v25 = vmul.f32 %v3451_v53, %v2633_v11 }
  0xf8   : > { %v1218_v24 = vadd.f32 %v1150_v28, %v977_v54  ;;  %v1219_v47 = vadd.f32 %v1152_v62, %v978_v43  ;;  %v1392_v23 = vrot.slane %v1267_v34, 2  ;;  %v1493_v13 = vmul.f32 %v3455_v26, %v2633_v11 }
  0xf9   : > { %v1391_v50 = vsel %vm771_vm2, %v1389_v63, %v1390_v61  ;;  %v1571_v20 = vmul.f32 %v3451_v53, %v2638_v15  ;;  %v1572_v42 = vmul.f32 %v3455_v26, %v2638_v15  ;;  %v1573_v58 = vmul.f32 %v2638_v15, %v3459_v2 }
  0xfa   : > { %v1393_v3 = vsel %vm771_vm2, %v1390_v61, %v1392_v23  ;;  %v1459_v45 = vadd.f32 %v1391_v50, %v1218_v24  ;;  %v1812_v4 = vmul.f32 %v3451_v53, %v2640_v16  ;;  %v1813_v29 = vmul.f32 %v3455_v26, %v2640_v16 }
  0xfb   : > { %v1460_v57 = vadd.f32 %v1393_v3, %v1219_v47  ;;  %v1695_v18 = vrot.slane %v1571_v20, 1  ;;  %v1696_v21 = vrot.slane %v1572_v42, 1  ;;  %v1698_v52 = vrot.slane %v1573_v58, 1 }
  0xfc   : > { %v1524_v0 = vadd.f32 %v1492_v25, %v1459_v45  ;;  %v1814_v37 = vmul.f32 %v2640_v16, %v3459_v2  ;;  %v1936_v55 = vrot.slane %v1812_v4, 2  ;;  %v1937_v51 = vrot.slane %v1813_v29, 2 }
  0xfd   : > { %v1525_v54 = vadd.f32 %v1493_v13, %v1460_v57  ;;  %v1697_v43 = vsel %vm529_vm1, %v1695_v18, %v1696_v21  ;;  %v1699_v34 = vsel %vm529_vm1, %v1696_v21, %v1698_v52  ;;  %v374_v63 = vmul.f32 %v2616_v5, %v2973_v12 }
  0xfe   : > { %v1765_v28 = vadd.f32 %v1697_v43, %v1524_v0  ;;  %v1938_v62 = vsel %vm771_vm2, %v1936_v55, %v1937_v51  ;;  %v1939_v61 = vrot.slane %v1814_v37, 2  ;;  %v375_v25 = vmul.f32 %v2616_v5, %v2977_v36 }
  0xff   : > { %v1766_v24 = vadd.f32 %v1699_v34, %v1525_v54  ;;  %v442_v47 = vmul.f32 %v2618_v6, %v2973_v12  ;;  %v443_v23 = vmul.f32 %v2618_v6, %v2977_v36  ;;  %v444_v13 = vmul.f32 %v2618_v6, %v2979_v46 }
 0x100   : > { %v1940_v50 = vsel %vm771_vm2, %v1937_v51, %v1939_v61  ;;  %v2006_v20 = vadd.f32 %v1938_v62, %v1765_v28  ;;  %v684_v42 = vmul.f32 %v2620_v7, %v2973_v12  ;;  %v685_v58 = vmul.f32 %v2620_v7, %v2977_v36 }
 0x101   : > { %v2007_v3 = vadd.f32 %v1940_v50, %v1766_v24  ;;  %v545_v45 = vrot.slane %v442_v47, 1  ;;  %v546_v4 = vrot.slane %v443_v23, 1  ;;  %v548_v29 = vrot.slane %v444_v13, 1 }
 0x102   : > { %v2041_v57 = vadd.f32 %v3215_v39, %v2006_v20  ;;  %v686_v18 = vmul.f32 %v2620_v7, %v2979_v46  ;;  %v787_v21 = vrot.slane %v684_v42, 2  ;;  %v788_v52 = vrot.slane %v685_v58, 2 }
 0x103   : > { %v2042_v0 = vadd.f32 %v3215_v39, %v2007_v3  ;;  %v547_v37 = vsel %vm529_vm1, %v545_v45, %v546_v4  ;;  %v549_v12 = vsel %vm529_vm1, %v546_v4, %v548_v29  ;;  %v923_v36 = vmul.f32 %v2707_v40, %v2627_v8 }
 0x104   : > { %v2073_v55 = vmax.f32 %v2041_v57, 0.0  ;;  %v648_v51 = vadd.f32 %v547_v37, %v374_v63  ;;  %v649_v54 = vadd.f32 %v549_v12, %v375_v25  ;;  %v789_v43 = vsel %vm771_vm2, %v787_v21, %v788_v52 }
 0x105   : > { %v2074_v34 = vmax.f32 %v2042_v0, 0.0  ;;  %v790_v28 = vrot.slane %v686_v18, 2  ;;  %v924_v46 = vmul.f32 %v2713_v49, %v2627_v8  ;;  %v991_v62 = vmul.f32 %v2707_v40, %v2629_v9 }
 0x106   : > { %v890_v61 = vadd.f32 %v789_v43, %v648_v51  ;;  %v992_v24 = vmul.f32 %v2713_v49, %v2629_v9  ;;  %v993_v47 = vmul.f32 %v2629_v9, %v2723_v56  ;;  %v1232_v63 = vmul.f32 %v2707_v40, %v2631_v10  ;;  %v3983_v51 = vld [vmem:[#allocation3_spill] sm:$0xff] }
 0x107   : > { %v2091_v25 = vpack.c.bf16 %v2074_v34, %v2073_v55  ;;  %v791_v23 = vsel %vm771_vm2, %v788_v52, %v790_v28  ;;  %v1093_v13 = vrot.slane %v991_v62, 1  ;;  %v1233_v50 = vmul.f32 %v2713_v49, %v2631_v10  ;;  %v3982_v49 = vld [vmem:[#allocation2_spill] sm:$0xff] }
 0x108   : > { %v891_v20 = vadd.f32 %v791_v23, %v649_v54  ;;  %v955_v42 = vadd.f32 %v923_v36, %v890_v61  ;;  %v1094_v58 = vrot.slane %v992_v24, 1  ;;  %v1096_v3 = vrot.slane %v993_v47, 1 }
 0x109   : > { %2448 = vmatmul.msk.bf16.gmra.mxu3 %vm2098_vm3, %v2091_v25  ;;  %v1234_v45 = vmul.f32 %v2631_v10, %v2723_v56  ;;  %v1334_v4 = vrot.slane %v1232_v63, 2  ;;  %v1335_v29 = vrot.slane %v1233_v50, 2  ;;  %v1470_v40 = vmul.f32 %v2633_v11, %v2730_v60 }
 0x10a   : > { %v956_v57 = vadd.f32 %v924_v46, %v891_v20  ;;  %v1095_v18 = vsel %vm529_vm1, %v1093_v13, %v1094_v58  ;;  %v1097_v21 = vsel %vm529_vm1, %v1094_v58, %v1096_v3  ;;  %v1471_v52 = vmul.f32 %v2633_v11, %v3982_v49 }
 0x10b   : > { %v1196_v0 = vadd.f32 %v1095_v18, %v955_v42  ;;  %v1336_v37 = vsel %vm771_vm2, %v1334_v4, %v1335_v29  ;;  %v1337_v12 = vrot.slane %v1234_v45, 2  ;;  %v1538_v56 = vmul.f32 %v2638_v15, %v2730_v60 }
 0x10c   : > { %v1197_v36 = vadd.f32 %v1097_v21, %v956_v57  ;;  %v1539_v55 = vmul.f32 %v2638_v15, %v3982_v49  ;;  %v1540_v54 = vmul.f32 %v2638_v15, %v3983_v51  ;;  %v1779_v43 = vmul.f32 %v2640_v16, %v2730_v60 }
 0x10d   : > { %v1338_v34 = vsel %vm771_vm2, %v1335_v29, %v1337_v12  ;;  %v1437_v28 = vadd.f32 %v1336_v37, %v1196_v0  ;;  %v1640_v46 = vrot.slane %v1538_v56, 1  ;;  %v1780_v62 = vmul.f32 %v2640_v16, %v3982_v49 }
 0x10e   : > { %v1438_v61 = vadd.f32 %v1338_v34, %v1197_v36  ;;  %v1641_v24 = vrot.slane %v1539_v55, 1  ;;  %v1643_v47 = vrot.slane %v1540_v54, 1  ;;  %v1781_v63 = vmul.f32 %v2640_v16, %v3983_v51 }
 0x10f   : > { %v1502_v25 = vadd.f32 %v1470_v40, %v1437_v28  ;;  %v1881_v23 = vrot.slane %v1779_v43, 2  ;;  %v1882_v13 = vrot.slane %v1780_v62, 2  ;;  %v382_v50 = vmul.f32 %v2616_v5, %v3044_v32 }
 0x110   : > { %v1503_v60 = vadd.f32 %v1471_v52, %v1438_v61  ;;  %v1642_v20 = vsel %vm529_vm1, %v1640_v46, %v1641_v24  ;;  %v1644_v42 = vsel %vm529_vm1, %v1641_v24, %v1643_v47  ;;  %v1884_v58 = vrot.slane %v1781_v63, 2 }
 0x111   : > { %v1743_v3 = vadd.f32 %v1642_v20, %v1502_v25  ;;  %v1883_v45 = vsel %vm771_vm2, %v1881_v23, %v1882_v13  ;;  %v383_v4 = vmul.f32 %v2616_v5, %v3049_v30  ;;  %v454_v29 = vmul.f32 %v2618_v6, %v3044_v32 }
 0x112   : > { %v1744_v40 = vadd.f32 %v1644_v42, %v1503_v60  ;;  %v1885_v57 = vsel %vm771_vm2, %v1882_v13, %v1884_v58  ;;  %v455_v18 = vmul.f32 %v2618_v6, %v3049_v30  ;;  %v456_v21 = vmul.f32 %v2618_v6, %v3051_v38 }
 0x113   : > { %v1984_v49 = vadd.f32 %v1883_v45, %v1743_v3  ;;  %v565_v52 = vrot.slane %v454_v29, 1  ;;  %v696_v0 = vmul.f32 %v2620_v7, %v3044_v32  ;;  %v697_v37 = vmul.f32 %v2620_v7, %v3049_v30 }
 0x114   : > { %v1985_v12 = vadd.f32 %v1885_v57, %v1744_v40  ;;  %v566_v56 = vrot.slane %v455_v18, 1  ;;  %v568_v36 = vrot.slane %v456_v21, 1  ;;  %v698_v55 = vmul.f32 %v2620_v7, %v3051_v38 }
 0x115   : > { %v2019_v51 = vadd.f32 %v3215_v39, %v1984_v49  ;;  %v807_v54 = vrot.slane %v696_v0, 2  ;;  %v808_v43 = vrot.slane %v697_v37, 2  ;;  %v931_v34 = vmul.f32 %v2799_v44, %v2627_v8  ;;  %v3984_v0 = vld [vmem:[#allocation6_spill] sm:$0xff] }
 0x116   : > { %v2020_v28 = vadd.f32 %v3215_v39, %v1985_v12  ;;  %v567_v32 = vsel %vm529_vm1, %v565_v52, %v566_v56  ;;  %v569_v46 = vsel %vm529_vm1, %v566_v56, %v568_v36  ;;  %v810_v30 = vrot.slane %v698_v55, 2 }
 0x117   : > { %v2051_v62 = vmax.f32 %v2019_v51, 0.0  ;;  %v656_v61 = vadd.f32 %v567_v32, %v382_v50  ;;  %v657_v24 = vadd.f32 %v569_v46, %v383_v4  ;;  %v809_v47 = vsel %vm771_vm2, %v807_v54, %v808_v43  ;;  %v3985_v51 = vld [vmem:[#allocation7_spill] sm:$0xff] }
 0x118   : > { %v2052_v38 = vmax.f32 %v2020_v28, 0.0  ;;  %v811_v63 = vsel %vm771_vm2, %v808_v43, %v810_v30  ;;  %v932_v25 = vmul.f32 %v3977_v19, %v2627_v8  ;;  %v1003_v23 = vmul.f32 %v2799_v44, %v2629_v9 }
 0x119   : > { %v898_v39 = vadd.f32 %v809_v47, %v656_v61  ;;  %v899_v13 = vadd.f32 %v811_v63, %v657_v24  ;;  %v1004_v60 = vmul.f32 %v3977_v19, %v2629_v9  ;;  %v1005_v50 = vmul.f32 %v2629_v9, %v3978_v48 }
 0x11a   : > { %v2080_v20 = vpack.c.bf16 %v2052_v38, %v2051_v62  ;;  %v1113_v42 = vrot.slane %v1003_v23, 1  ;;  %v1244_v58 = vmul.f32 %v2799_v44, %v2631_v10  ;;  %v1245_v3 = vmul.f32 %v3977_v19, %v2631_v10 }
 0x11b   : > { %v963_v45 = vadd.f32 %v931_v34, %v898_v39  ;;  %v964_v4 = vadd.f32 %v932_v25, %v899_v13  ;;  %v1114_v29 = vrot.slane %v1004_v60, 1  ;;  %v1116_v40 = vrot.slane %v1005_v50, 1 }
 0x11c   : > { %2437 = vmatmul.msk.bf16.gmra.mxu0 %vm2098_vm3, %v2080_v20  ;;  %v1246_v57 = vmul.f32 %v2631_v10, %v3978_v48  ;;  %v1354_v18 = vrot.slane %v1244_v58, 2  ;;  %v1355_v21 = vrot.slane %v1245_v3, 2  ;;  %v1478_v49 = vmul.f32 %v2633_v11, %v2817_v17 }
 0x11d   : > { %v1115_v52 = vsel %vm529_vm1, %v1113_v42, %v1114_v29  ;;  %v1117_v44 = vsel %vm529_vm1, %v1114_v29, %v1116_v40  ;;  %v1479_v19 = vmul.f32 %v2633_v11, %v3984_v0  ;;  %v1550_v37 = vmul.f32 %v2638_v15, %v2817_v17 }
 0x11e   : > { %v1204_v12 = vadd.f32 %v1115_v52, %v963_v45  ;;  %v1205_v56 = vadd.f32 %v1117_v44, %v964_v4  ;;  %v1356_v36 = vsel %vm771_vm2, %v1354_v18, %v1355_v21  ;;  %v1357_v48 = vrot.slane %v1246_v57, 2 }
 0x11f   : > { %v1551_v55 = vmul.f32 %v2638_v15, %v3984_v0  ;;  %v1552_v54 = vmul.f32 %v2638_v15, %v3985_v51  ;;  %v1660_v43 = vrot.slane %v1550_v37, 1  ;;  %v1791_v34 = vmul.f32 %v2640_v16, %v2817_v17 }
 0x120   : > { %v1358_v28 = vsel %vm771_vm2, %v1355_v21, %v1357_v48  ;;  %v1445_v32 = vadd.f32 %v1356_v36, %v1204_v12  ;;  %v1792_v46 = vmul.f32 %v2640_v16, %v3984_v0  ;;  %v1793_v30 = vmul.f32 %v2640_v16, %v3985_v51 }
 0x121   : > { %v1446_v62 = vadd.f32 %v1358_v28, %v1205_v56  ;;  %v1661_v61 = vrot.slane %v1551_v55, 1  ;;  %v1663_v24 = vrot.slane %v1552_v54, 1  ;;  %v1901_v47 = vrot.slane %v1791_v34, 2 }
 0x122   : > { %v1510_v38 = vadd.f32 %v1478_v49, %v1445_v32  ;;  %v1902_v63 = vrot.slane %v1792_v46, 2  ;;  %v1904_v25 = vrot.slane %v1793_v30, 2  ;;  %v390_v23 = vmul.f32 %v2616_v5, %v3116_v27 }
 0x123   : > { %v1511_v17 = vadd.f32 %v1479_v19, %v1446_v62  ;;  %v1662_v39 = vsel %vm529_vm1, %v1660_v43, %v1661_v61  ;;  %v1664_v13 = vsel %vm529_vm1, %v1661_v61, %v1663_v24  ;;  %v391_v60 = vmul.f32 %v2616_v5, %v3119_v31  ;;  %v3669_v19 = vld [vmem:[%s3937_s2] ss:$0 sm:$0xff] }
 0x124   : > { %v1751_v50 = vadd.f32 %v1662_v39, %v1510_v38  ;;  %v1903_v20 = vsel %vm771_vm2, %v1901_v47, %v1902_v63  ;;  %v1905_v42 = vsel %vm771_vm2, %v1902_v63, %v1904_v25  ;;  %v466_v58 = vmul.f32 %v2618_v6, %v3116_v27 }
 0x125   : > { %v1752_v3 = vadd.f32 %v1664_v13, %v1511_v17  ;;  %v467_v45 = vmul.f32 %v2618_v6, %v3119_v31  ;;  %v468_v4 = vmul.f32 %v2618_v6, %v3122_v33  ;;  %v708_v29 = vmul.f32 %v2620_v7, %v3116_v27 }
 0x126   : > { %v1992_v40 = vadd.f32 %v1903_v20, %v1751_v50  ;;  %v585_v57 = vrot.slane %v466_v58, 1  ;;  %v709_v18 = vmul.f32 %v2620_v7, %v3119_v31  ;;  %v710_v21 = vmul.f32 %v2620_v7, %v3122_v33 }
 0x127   : > { %v1993_v49 = vadd.f32 %v1905_v42, %v1752_v3  ;;  %v586_v52 = vrot.slane %v467_v45, 1  ;;  %v588_v44 = vrot.slane %v468_v4, 1  ;;  %v827_v0 = vrot.slane %v708_v29, 2  ;;  %v3987_v45 = vld [vmem:[#allocation12_spill] sm:$0xff] }
 0x128   : > { %v2027_v37 = vadd.f32 %v3669_v19, %v1992_v40  ;;  %v828_v27 = vrot.slane %v709_v18, 2  ;;  %v830_v12 = vrot.slane %v710_v21, 2  ;;  %v939_v56 = vmul.f32 %v3979_v14, %v2627_v8 }
 0x129   : > { %v2028_v31 = vadd.f32 %v3669_v19, %v1993_v49  ;;  %v587_v33 = vsel %vm529_vm1, %v585_v57, %v586_v52  ;;  %v589_v36 = vsel %vm529_vm1, %v586_v52, %v588_v44  ;;  %v940_v48 = vmul.f32 %v3980_v35, %v2627_v8  ;;  %v3988_v49 = vld [vmem:[#allocation13_spill] sm:$0xff] }
 0x12a   : > { %v2059_v55 = vmax.f32 %v2027_v37, 0.0  ;;  %v664_v51 = vadd.f32 %v587_v33, %v390_v23  ;;  %v665_v54 = vadd.f32 %v589_v36, %v391_v60  ;;  %v829_v43 = vsel %vm771_vm2, %v827_v0, %v828_v27  ;;  %v310_v0 = vld [vmem:[%s2625_s8 + $0xcc] sm:$0xff]  }
 0x12b   : > { %v2060_v34 = vmax.f32 %v2028_v31, 0.0  ;;  %v831_v28 = vsel %vm771_vm2, %v828_v27, %v830_v12  ;;  %v1015_v32 = vmul.f32 %v3979_v14, %v2629_v9  ;;  %v1016_v46 = vmul.f32 %v3980_v35, %v2629_v9 }
 0x12c   : > { %v906_v30 = vadd.f32 %v829_v43, %v664_v51  ;;  %v907_v62 = vadd.f32 %v831_v28, %v665_v54  ;;  %v1017_v61 = vmul.f32 %v2629_v9, %v3981_v22  ;;  %v1256_v24 = vmul.f32 %v3979_v14, %v2631_v10  ;;  %v3986_v14 = vld [vmem:[#allocation11_spill] sm:$0xff]  ;;  %v3718_v51 = vpop.f32.mrf.mxu0  ;;  %v3720_v54 = vpop.f32.mrf.mxu1 }
 0x12d   : > { %v2084_v47 = vpack.c.bf16 %v2060_v34, %v2059_v55  ;;  %v1133_v38 = vrot.slane %v1015_v32, 1  ;;  %v1134_v63 = vrot.slane %v1016_v46, 1  ;;  %v1257_v25 = vmul.f32 %v3980_v35, %v2631_v10  ;;  %v3716_v55 = vld [vmem:[%s2625_s8 + $0xd4] sm:$0x1]  ;;  %v3725_v46 = vpop.f32.mrf.mxu2 }
 0x12e   : > { %v971_v23 = vadd.f32 %v939_v56, %v906_v30  ;;  %v972_v17 = vadd.f32 %v940_v48, %v907_v62  ;;  %v1136_v39 = vrot.slane %v1017_v61, 1  ;;  %v1258_v13 = vmul.f32 %v2631_v10, %v3981_v22 }
 0x12f   : > { %2441 = vmatmul.msk.bf16.gmra.mxu1 %vm2098_vm3, %v2084_v47  ;;  %v1135_v60 = vsel %vm529_vm1, %v1133_v38, %v1134_v63  ;;  %v1374_v50 = vrot.slane %v1256_v24, 2  ;;  %v1375_v20 = vrot.slane %v1257_v25, 2  ;;  %v1486_v42 = vmul.f32 %v2633_v11, %v3986_v14  ;;  %v3730_v47 = vpop.f32.mrf.mxu3 }
 0x130   : > { %v1137_v58 = vsel %vm529_vm1, %v1134_v63, %v1136_v39  ;;  %v1212_v3 = vadd.f32 %v1135_v60, %v971_v23  ;;  %v1377_v35 = vrot.slane %v1258_v13, 2  ;;  %v1487_v4 = vmul.f32 %v2633_v11, %v3987_v45 }
 0x131   : > { %v1213_v29 = vadd.f32 %v1137_v58, %v972_v17  ;;  %v1376_v22 = vsel %vm771_vm2, %v1374_v50, %v1375_v20  ;;  %v1562_v40 = vmul.f32 %v2638_v15, %v3986_v14  ;;  %v1563_v57 = vmul.f32 %v2638_v15, %v3987_v45 }
 0x132   : > { %v1378_v18 = vsel %vm771_vm2, %v1375_v20, %v1377_v35  ;;  %v1453_v21 = vadd.f32 %v1376_v22, %v1212_v3  ;;  %v1564_v52 = vmul.f32 %v2638_v15, %v3988_v49  ;;  %v1803_v44 = vmul.f32 %v2640_v16, %v3986_v14 }
 0x133   : > { %v1454_v37 = vadd.f32 %v1378_v18, %v1213_v29  ;;  %v1680_v27 = vrot.slane %v1562_v40, 1  ;;  %v1681_v12 = vrot.slane %v1563_v57, 1  ;;  %v1804_v56 = vmul.f32 %v2640_v16, %v3987_v45 }
 0x134   : > { %v1518_v31 = vadd.f32 %v1486_v42, %v1453_v21  ;;  %v1683_v33 = vrot.slane %v1564_v52, 1  ;;  %v1805_v36 = vmul.f32 %v2640_v16, %v3988_v49  ;;  %v1921_v48 = vrot.slane %v1803_v44, 2  ;;  %v3755_v18 = vpop.f32.mrf.mxu0 }
 0x135   : > { %v1519_v43 = vadd.f32 %v1487_v4, %v1454_v37  ;;  %v1682_v34 = vsel %vm529_vm1, %v1680_v27, %v1681_v12  ;;  %v1922_v28 = vrot.slane %v1804_v56, 2  ;;  %v3723_v32 = vunpack.c.l.bf16 %v310_v0  ;;  %v3765_v27 = vpop.f32.mrf.mxu2 }
 0x136   : > { %v1684_v30 = vsel %vm529_vm1, %v1681_v12, %v1683_v33  ;;  %v1759_v62 = vadd.f32 %v1682_v34, %v1518_v31  ;;  %v1924_v61 = vrot.slane %v1805_v36, 2  ;;  %v3728_v24 = vunpack.c.h.bf16 %v310_v0 }
 0x137   : > { %v1760_v38 = vadd.f32 %v1684_v30, %v1519_v43  ;;  %v1923_v63 = vsel %vm771_vm2, %v1921_v48, %v1922_v28  ;;  %v366_v25 = vunpack.c.l.bf16 %v3716_v55  ;;  %v398_v23 = vmul.f32 %v2616_v5, %v3188_v59  ;;  %v3777_v34 = vpop.f32.mrf.mxu3 }
 0x138   : > { %v1925_v17 = vsel %vm771_vm2, %v1922_v28, %v1924_v61  ;;  %v2000_v39 = vadd.f32 %v1923_v63, %v1759_v62  ;;  %v399_v13 = vmul.f32 %v2616_v5, %v3191_v1  ;;  %v478_v60 = vmul.f32 %v2618_v6, %v3188_v59 }
 0x139   : > { %v2001_v50 = vadd.f32 %v1925_v17, %v1760_v38  ;;  %v479_v20 = vmul.f32 %v2618_v6, %v3191_v1  ;;  %v480_v14 = vmul.f32 %v2618_v6, %v3194_v41  ;;  %v720_v42 = vmul.f32 %v2620_v7, %v3188_v59 }
 0x13a   : > { %v2035_v58 = vadd.f32 %v3669_v19, %v2000_v39  ;;  %v605_v3 = vrot.slane %v478_v60, 1  ;;  %v721_v35 = vmul.f32 %v2620_v7, %v3191_v1  ;;  %v722_v5 = vmul.f32 %v2620_v7, %v3194_v41  ;;  %v3761_v41 = vpop.f32.mrf.mxu1 }
 0x13b   : > { %v2036_v45 = vadd.f32 %v3669_v19, %v2001_v50  ;;  %v606_v4 = vrot.slane %v479_v20, 1  ;;  %v608_v29 = vrot.slane %v480_v14, 1  ;;  %v847_v22 = vrot.slane %v720_v42, 2 }
 0x13c   : > { %v2067_v40 = vmax.f32 %v2035_v58, 0.0  ;;  %v848_v57 = vrot.slane %v721_v35, 2  ;;  %v850_v6 = vrot.slane %v722_v5, 2  ;;  %v947_v59 = vmul.f32 %v3451_v53, %v2627_v8 }
 0x13d   : > { %v2068_v21 = vmax.f32 %v2036_v45, 0.0  ;;  %v607_v49 = vsel %vm529_vm1, %v605_v3, %v606_v4  ;;  %v609_v1 = vsel %vm529_vm1, %v606_v4, %v608_v29  ;;  %v948_v7 = vmul.f32 %v3455_v26, %v2627_v8  ;;  %v3800_v3 = vld [vmem:[%s3939_s4] ss:$0 sm:$0xff] }
 0x13e   : > { %v672_v52 = vadd.f32 %v607_v49, %v398_v23  ;;  %v673_v44 = vadd.f32 %v609_v1, %v399_v13  ;;  %v849_v0 = vsel %vm771_vm2, %v847_v22, %v848_v57  ;;  %v851_v37 = vsel %vm771_vm2, %v848_v57, %v850_v6  ;;  %v2205_v49 = vpop.f32.mrf.mxu2 }
 0x13f   : > { %v2088_v12 = vpack.c.bf16 %v2068_v21, %v2067_v40  ;;  %v1027_v56 = vmul.f32 %v3451_v53, %v2629_v9  ;;  %v1028_v31 = vmul.f32 %v3455_v26, %v2629_v9  ;;  %v1029_v8 = vmul.f32 %v2629_v9, %v3459_v2 }
 0x140   : > { %v914_v33 = vadd.f32 %v849_v0, %v672_v52  ;;  %v915_v36 = vadd.f32 %v851_v37, %v673_v44  ;;  %v1268_v48 = vmul.f32 %v3451_v53, %v2631_v10  ;;  %v1269_v43 = vmul.f32 %v3455_v26, %v2631_v10 }
 0x141   : > { %2445 = vmatmul.msk.bf16.gmra.mxu2 %vm2098_vm3, %v2088_v12  ;;  %v1153_v28 = vrot.slane %v1027_v56, 1  ;;  %v1154_v30 = vrot.slane %v1028_v31, 1  ;;  %v1156_v62 = vrot.slane %v1029_v8, 1  ;;  %v1270_v61 = vmul.f32 %v2631_v10, %v3459_v2  ;;  %v2165_v10 = vpop.f32.mrf.mxu0 }
 0x142   : > { %v979_v38 = vadd.f32 %v947_v59, %v914_v33  ;;  %v980_v9 = vadd.f32 %v948_v7, %v915_v36  ;;  %v1394_v63 = vrot.slane %v1268_v48, 2  ;;  %v1395_v23 = vrot.slane %v1269_v43, 2  ;;  %v2185_v40 = vpop.f32.mrf.mxu1 }
 0x143   : > { %v1155_v17 = vsel %vm529_vm1, %v1153_v28, %v1154_v30  ;;  %v1157_v53 = vsel %vm529_vm1, %v1154_v30, %v1156_v62  ;;  %v1397_v39 = vrot.slane %v1270_v61, 2  ;;  %v1494_v26 = vmul.f32 %v2633_v11, %v3723_v32 }
 0x144   : > { %v1220_v13 = vadd.f32 %v1155_v17, %v979_v38  ;;  %v1221_v60 = vadd.f32 %v1157_v53, %v980_v9  ;;  %v1396_v50 = vsel %vm771_vm2, %v1394_v63, %v1395_v23  ;;  %v1495_v20 = vmul.f32 %v2633_v11, %v3728_v24 }
 0x145   : > { %v1398_v2 = vsel %vm771_vm2, %v1395_v23, %v1397_v39  ;;  %v1574_v14 = vmul.f32 %v2638_v15, %v3723_v32  ;;  %v1575_v42 = vmul.f32 %v2638_v15, %v3728_v24  ;;  %v1576_v58 = vmul.f32 %v2638_v15, %v366_v25 }
 0x146   : > { %v1461_v35 = vadd.f32 %v1396_v50, %v1220_v13  ;;  %v1462_v11 = vadd.f32 %v1398_v2, %v1221_v60  ;;  %v1815_v5 = vmul.f32 %v2640_v16, %v3723_v32  ;;  %v1816_v45 = vmul.f32 %v2640_v16, %v3728_v24 }
 0x147   : > { %v1700_v4 = vrot.slane %v1574_v14, 1  ;;  %v1701_v29 = vrot.slane %v1575_v42, 1  ;;  %v1703_v22 = vrot.slane %v1576_v58, 1  ;;  %v1817_v15 = vmul.f32 %v2640_v16, %v366_v25  ;;  %v2225_v16 = vpop.f32.mrf.mxu3 }
 0x148   : > { %v1526_v57 = vadd.f32 %v1494_v26, %v1461_v35  ;;  %v1527_v6 = vadd.f32 %v1495_v20, %v1462_v11  ;;  %v1941_v59 = vrot.slane %v1815_v5, 2  ;;  %v1942_v21 = vrot.slane %v1816_v45, 2  ;;  %v2207_v20 = vpop.f32.mrf.mxu2 }
 0x149   : > { %v1702_v1 = vsel %vm529_vm1, %v1700_v4, %v1701_v29  ;;  %v1704_v32 = vsel %vm529_vm1, %v1701_v29, %v1703_v22  ;;  %v1944_v7 = vrot.slane %v1817_v15, 2  ;;  %v2161_v24 = vadd.f32 %v3800_v3, %v3718_v51  ;;  %v2167_v33 = vpop.f32.mrf.mxu0 }
 0x14a   : > { %v1767_v52 = vadd.f32 %v1702_v1, %v1526_v57  ;;  %v1768_v44 = vadd.f32 %v1704_v32, %v1527_v6  ;;  %v1943_v55 = vsel %vm771_vm2, %v1941_v59, %v1942_v21  ;;  %v2181_v37 = vadd.f32 %v3800_v3, %v3720_v54  ;;  %v2187_v26 = vpop.f32.mrf.mxu1 }
 0x14b   : > { %v1945_v25 = vsel %vm771_vm2, %v1942_v21, %v1944_v7  ;;  %v2240_v0 = vmax.f32 %v2161_v24, 0.0  ;;  %v2201_v12 = vadd.f32 %v3800_v3, %v3725_v46  ;;  %v2221_v51 = vadd.f32 %v3800_v3, %v3730_v47 }
 0x14c   : > { %v2008_v56 = vadd.f32 %v1943_v55, %v1767_v52  ;;  %v2009_v31 = vadd.f32 %v1945_v25, %v1768_v44  ;;  %v2163_v8 = vadd.f32 %v3800_v3, %v3755_v18  ;;  %v2248_v54 = vmax.f32 %v2181_v37, 0.0 }
 0x14d   : > { %v2272_v36 = vpack.c.bf16 %v2240_v0, %v2240_v0  ;;  %v2256_v48 = vmax.f32 %v2201_v12, 0.0  ;;  %v2183_v46 = vadd.f32 %v3800_v3, %v3761_v41  ;;  %v2264_v30 = vmax.f32 %v2221_v51, 0.0 }
 0x14e   : > { %v2043_v43 = vadd.f32 %v3669_v19, %v2008_v56  ;;  %v2044_v28 = vadd.f32 %v3669_v19, %v2009_v31  ;;  %v2241_v62 = vmax.f32 %v2163_v8, 0.0  ;;  %v2280_v47 = vpack.c.bf16 %v2248_v54, %v2248_v54 }
 0x14f   : > { %2305 = vst.msk [vmem:[%s3823_s23] sm:$0xf] %vm2304_vm4, %v2272_v36  ;;  %v2288_v61 = vpack.c.bf16 %v2256_v48, %v2256_v48  ;;  %v2249_v18 = vmax.f32 %v2183_v46, 0.0  ;;  %v2203_v38 = vadd.f32 %v3800_v3, %v3765_v27  ;;  %v2296_v23 = vpack.c.bf16 %v2264_v30, %v2264_v30  ;;  %v2227_v5 = vpop.f32.mrf.mxu3 }
 0x150   : > { %v2075_v9 = vmax.f32 %v2043_v43, 0.0  ;;  %v2076_v63 = vmax.f32 %v2044_v28, 0.0  ;;  %v2273_v41 = vpack.c.bf16 %v2241_v62, %v2241_v62  ;;  %2313 = vst.msk [vmem:[%s3823_s23 + $0x20] sm:$0xf] %vm2304_vm4, %v2280_v47  ;;  %v2223_v53 = vadd.f32 %v3800_v3, %v3777_v34 }
 0x151   : > { %v2281_v17 = vpack.c.bf16 %v2249_v18, %v2249_v18  ;;  %v2257_v19 = vmax.f32 %v2203_v38, 0.0  ;;  %v2166_v39 = vadd.f32 %v3800_v3, %v2165_v10  ;;  %2321 = vst.msk [vmem:[%s3823_s23 + $0x40] sm:$0xf] %vm2304_vm4, %v2288_v61  ;;  %v2186_v27 = vadd.f32 %v3800_v3, %v2185_v40  ;;  %v2170_v6 = vpop.f32.mrf.mxu0 }
 0x152   : > { %v2092_v13 = vpack.c.bf16 %v2076_v63, %v2075_v9  ;;  %v2206_v60 = vadd.f32 %v3800_v3, %v2205_v49  ;;  %v2226_v50 = vadd.f32 %v3800_v3, %v2225_v16  ;;  %2329 = vst.msk [vmem:[%s3823_s23 + $0x60] sm:$0xf] %vm2304_vm4, %v2296_v23  ;;  %v2265_v14 = vmax.f32 %v2223_v53, 0.0 }
 0x153   : > { %v2289_v2 = vpack.c.bf16 %v2257_v19, %v2257_v19  ;;  %v2242_v34 = vmax.f32 %v2166_v39, 0.0  ;;  %v2168_v10 = vadd.f32 %v3800_v3, %v2167_v33  ;;  %2306 = vst.msk [vmem:[%s3823_s23 + $0x4] sm:$0xf] %vm2304_vm4, %v2273_v41  ;;  %v2250_v42 = vmax.f32 %v2186_v27, 0.0 }
 0x154   : > { %2449 = vmatmul.msk.bf16.gmra.mxu3 %vm2098_vm3, %v2092_v13  ;;  %v2258_v58 = vmax.f32 %v2206_v60, 0.0  ;;  %v2266_v35 = vmax.f32 %v2226_v50, 0.0  ;;  %v2188_v11 = vadd.f32 %v3800_v3, %v2187_v26  ;;  %2314 = vst.msk [vmem:[%s3823_s23 + $0x24] sm:$0xf] %vm2304_vm4, %v2281_v17  ;;  %v2297_v45 = vpack.c.bf16 %v2265_v14, %v2265_v14 }
 0x155   : > { %v2274_v4 = vpack.c.bf16 %v2242_v34, %v2242_v34  ;;  %v2243_v29 = vmax.f32 %v2168_v10, 0.0  ;;  %v2208_v22 = vadd.f32 %v3800_v3, %v2207_v20  ;;  %2322 = vst.msk [vmem:[%s3823_s23 + $0x44] sm:$0xf] %vm2304_vm4, %v2289_v2  ;;  %v2282_v15 = vpack.c.bf16 %v2250_v42, %v2250_v42 }
 0x156   : > { %v2290_v40 = vpack.c.bf16 %v2258_v58, %v2258_v58  ;;  %v2251_v57 = vmax.f32 %v2188_v11, 0.0  ;;  %2330 = vst.msk [vmem:[%s3823_s23 + $0x64] sm:$0xf] %vm2304_vm4, %v2297_v45  ;;  %v2298_v59 = vpack.c.bf16 %v2266_v35, %v2266_v35  ;;  %v2228_v49 = vadd.f32 %v3800_v3, %v2227_v5 }
 0x157   : > { %v2259_v21 = vmax.f32 %v2208_v22, 0.0  ;;  %v2171_v1 = vadd.f32 %v3800_v3, %v2170_v6  ;;  %2307 = vst.msk [vmem:[%s3823_s23 + $0x8] sm:$0xf] %vm2304_vm4, %v2274_v4  ;;  %v2275_v32 = vpack.c.bf16 %v2243_v29, %v2243_v29 }
 0x158   : > { %2315 = vst.msk [vmem:[%s3823_s23 + $0x28] sm:$0xf] %vm2304_vm4, %v2282_v15  ;;  %v2283_v7 = vpack.c.bf16 %v2251_v57, %v2251_v57  ;;  %v2267_v24 = vmax.f32 %v2228_v49, 0.0 }
 0x159   : > { %v2244_v52 = vmax.f32 %v2171_v1, 0.0  ;;  %2323 = vst.msk [vmem:[%s3823_s23 + $0x48] sm:$0xf] %vm2304_vm4, %v2290_v40  ;;  %v2291_v44 = vpack.c.bf16 %v2259_v21, %v2259_v21  ;;  %v2172_v56 = vpop.f32.mrf.mxu0 }
 0x15a   : > { %2331 = vst.msk [vmem:[%s3823_s23 + $0x68] sm:$0xf] %vm2304_vm4, %v2298_v59  ;;  %v2299_v55 = vpack.c.bf16 %v2267_v24, %v2267_v24  ;;  %v2173_v51 = vadd.f32 %v3800_v3, %v2172_v56 }
 0x15b   : > { %2308 = vst.msk [vmem:[%s3823_s23 + $0xc] sm:$0xf] %vm2304_vm4, %v2275_v32  ;;  %v2276_v16 = vpack.c.bf16 %v2244_v52, %v2244_v52 }
 0x15c   : > { %2316 = vst.msk [vmem:[%s3823_s23 + $0x2c] sm:$0xf] %vm2304_vm4, %v2283_v7  ;;  %v2245_v33 = vmax.f32 %v2173_v51, 0.0 }
 0x15d   : > { %2324 = vst.msk [vmem:[%s3823_s23 + $0x4c] sm:$0xf] %vm2304_vm4, %v2291_v44 }
 0x15e   : > { %2332 = vst.msk [vmem:[%s3823_s23 + $0x6c] sm:$0xf] %vm2304_vm4, %v2299_v55  ;;  %v2277_v54 = vpack.c.bf16 %v2245_v33, %v2245_v33 }
 0x15f   : > { %2309 = vst.msk [vmem:[%s3823_s23 + $0x10] sm:$0xf] %vm2304_vm4, %v2276_v16 }
 0x160   : > { %v2190_v25 = vpop.f32.mrf.mxu1  ;;  %2310 = vst.msk [vmem:[%s3823_s23 + $0x14] sm:$0xf] %vm2304_vm4, %v2277_v54 }
 0x161   : > { %v2191_v0 = vadd.f32 %v3800_v3, %v2190_v25 }
 0x163   : > { %v2252_v37 = vmax.f32 %v2191_v0, 0.0 }
 0x165   : > { %v2284_v12 = vpack.c.bf16 %v2252_v37, %v2252_v37 }
 0x167   : > { %2317 = vst.msk [vmem:[%s3823_s23 + $0x30] sm:$0xf] %vm2304_vm4, %v2284_v12 }
 0x168   : > { %v2192_v31 = vpop.f32.mrf.mxu1 }
 0x169   : > { %v2193_v8 = vadd.f32 %v3800_v3, %v2192_v31 }
 0x16b   : > { %v2253_v36 = vmax.f32 %v2193_v8, 0.0 }
 0x16d   : > { %v2285_v48 = vpack.c.bf16 %v2253_v36, %v2253_v36 }
 0x16f   : > { %2318 = vst.msk [vmem:[%s3823_s23 + $0x34] sm:$0xf] %vm2304_vm4, %v2285_v48 }
 0x179   : > { %v2210_v46 = vpop.f32.mrf.mxu2 }
 0x17a   : > { %v2211_v43 = vadd.f32 %v3800_v3, %v2210_v46 }
 0x17c   : > { %v2260_v28 = vmax.f32 %v2211_v43, 0.0 }
 0x17e   : > { %v2292_v30 = vpack.c.bf16 %v2260_v28, %v2260_v28 }
 0x180   : > { %2325 = vst.msk [vmem:[%s3823_s23 + $0x50] sm:$0xf] %vm2304_vm4, %v2292_v30 }
 0x181   : > { %v2212_v62 = vpop.f32.mrf.mxu2 }
 0x182   : > { %v2213_v47 = vadd.f32 %v3800_v3, %v2212_v62 }
 0x184   : > { %v2261_v61 = vmax.f32 %v2213_v47, 0.0 }
 0x186   : > { %v2293_v18 = vpack.c.bf16 %v2261_v61, %v2261_v61 }
 0x188   : > { %2326 = vst.msk [vmem:[%s3823_s23 + $0x54] sm:$0xf] %vm2304_vm4, %v2293_v18 }
 0x18c   : > { %v2230_v38 = vpop.f32.mrf.mxu3 }
 0x18d   : > { %v2231_v9 = vadd.f32 %v3800_v3, %v2230_v38 }
 0x18f   : > { %v2268_v63 = vmax.f32 %v2231_v9, 0.0 }
 0x191   : > { %v2300_v23 = vpack.c.bf16 %v2268_v63, %v2268_v63 }
 0x193   : > { %2333 = vst.msk [vmem:[%s3823_s23 + $0x70] sm:$0xf] %vm2304_vm4, %v2300_v23 }
 0x194   : > { %v2232_v41 = vpop.f32.mrf.mxu3 }
 0x195   : > { %v2233_v17 = vadd.f32 %v3800_v3, %v2232_v41 }
 0x197   : > { %v2269_v19 = vmax.f32 %v2233_v17, 0.0 }
 0x199   : > { %v2301_v53 = vpack.c.bf16 %v2269_v19, %v2269_v19  ;;  %v2175_v39 = vpop.f32.mrf.mxu0 }
 0x19a   : > { %v2176_v26 = vadd.f32 %v3800_v3, %v2175_v39 }
 0x19b   : > { %2334 = vst.msk [vmem:[%s3823_s23 + $0x74] sm:$0xf] %vm2304_vm4, %v2301_v53 }
 0x19c   : > { %v2246_v13 = vmax.f32 %v2176_v26, 0.0 }
 0x19e   : > { %v2278_v27 = vpack.c.bf16 %v2246_v13, %v2246_v13 }
 0x1a0   : > { %2311 = vst.msk [vmem:[%s3823_s23 + $0x18] sm:$0xf] %vm2304_vm4, %v2278_v27 }
 0x1a1   : > { %v2177_v14 = vpop.f32.mrf.mxu0 }
 0x1a2   : > { %v2178_v10 = vadd.f32 %v3800_v3, %v2177_v14 }
 0x1a4   : > { %v2247_v58 = vmax.f32 %v2178_v10, 0.0 }
 0x1a6   : > { %v2279_v11 = vpack.c.bf16 %v2247_v58, %v2247_v58 }
 0x1a8   : > { %2312 = vst.msk [vmem:[%s3823_s23 + $0x1c] sm:$0xf] %vm2304_vm4, %v2279_v11 }
 0x1ac   : > { %v2195_v60 = vpop.f32.mrf.mxu1 }
 0x1ad   : > { %v2196_v50 = vadd.f32 %v3800_v3, %v2195_v60 }
 0x1af   : > { %v2254_v20 = vmax.f32 %v2196_v50, 0.0 }
 0x1b1   : > { %v2286_v2 = vpack.c.bf16 %v2254_v20, %v2254_v20 }
 0x1b3   : > { %2319 = vst.msk [vmem:[%s3823_s23 + $0x38] sm:$0xf] %vm2304_vm4, %v2286_v2 }
 0x1b4   : > { %v2197_v34 = vpop.f32.mrf.mxu1 }
 0x1b5   : > { %v2198_v42 = vadd.f32 %v3800_v3, %v2197_v34 }
 0x1b7   : > { %v2255_v35 = vmax.f32 %v2198_v42, 0.0 }
 0x1b9   : > { %v2287_v5 = vpack.c.bf16 %v2255_v35, %v2255_v35 }
 0x1bb   : > { %2320 = vst.msk [vmem:[%s3823_s23 + $0x3c] sm:$0xf] %vm2304_vm4, %v2287_v5 }
 0x1c4   : > { %v2215_v45 = vpop.f32.mrf.mxu2 }
 0x1c5   : > { %v2216_v4 = vadd.f32 %v3800_v3, %v2215_v45 }
 0x1c7   : > { %v2262_v29 = vmax.f32 %v2216_v4, 0.0 }
 0x1c9   : > { %v2294_v22 = vpack.c.bf16 %v2262_v29, %v2262_v29 }
 0x1cb   : > { %2327 = vst.msk [vmem:[%s3823_s23 + $0x58] sm:$0xf] %vm2304_vm4, %v2294_v22 }
 0x1cc   : > { %v2217_v15 = vpop.f32.mrf.mxu2 }
 0x1cd   : > { %v2218_v40 = vadd.f32 %v3800_v3, %v2217_v15 }
 0x1cf   : > { %v2263_v57 = vmax.f32 %v2218_v40, 0.0 }
 0x1d1   : > { %v2295_v6 = vpack.c.bf16 %v2263_v57, %v2263_v57 }
 0x1d3   : > { %2328 = vst.msk [vmem:[%s3823_s23 + $0x5c] sm:$0xf] %vm2304_vm4, %v2295_v6 }
 0x1d7   : > { %v2235_v59 = vpop.f32.mrf.mxu3 }
 0x1d8   : > { %v2236_v21 = vadd.f32 %v3800_v3, %v2235_v59 }
 0x1da   : > { %v2270_v49 = vmax.f32 %v2236_v21, 0.0 }
 0x1dc   : > { %v2302_v1 = vpack.c.bf16 %v2270_v49, %v2270_v49 }
 0x1de   : > { %2335 = vst.msk [vmem:[%s3823_s23 + $0x78] sm:$0xf] %vm2304_vm4, %v2302_v1 }
 0x1df   : > { %v2237_v32 = vpop.f32.mrf.mxu3 }
 0x1e0   : > { %v2238_v7 = vadd.f32 %v3800_v3, %v2237_v32 }
 0x1e2   : > { %v2271_v24 = vmax.f32 %v2238_v7, 0.0 }
 0x1e4   : > { %v2303_v52 = vpack.c.bf16 %v2271_v24, %v2271_v24 }
 0x1e6   : > { %2336 = vst.msk [vmem:[%s3823_s23 + $0x7c] sm:$0xf] %vm2304_vm4, %v2303_v52 }
 0x1e7 PF: > { %s15_s20 = sadd.s32 1, %s2551_s20   ;;  %s3989_s18 = smov %s2547_s19 }
 0x1e8   : > { %p12_p5 = scmp.ge.s32.totalorder %s15_s20, 4   ;;  %s3990_s19 = smov %s3992_s21 }
 0x1ea   :  { %14 = sbr.rel (!%p12_p5) target bundleno = 2 (0x2), region = 71 }

</bundles_post_ra>
